<compile_context>
chip_gen: v7x
topology: tpu7x:2x2x1
jax: 0.10.0
libtpu: 0.0.40
codegen_flags: <defaults>
</compile_context>

<pallas_src>
import math

import jax
import jax.numpy as jnp
from jax import lax
from jax.experimental import pallas as pl
from jax.experimental.pallas import tpu as pltpu  # noqa: F401 (TPU backend import)

# ----------------------- small, GPT-2-consistent config -----------------------
HIDDEN = 32          # n_embd
N_LAYERS = 2         # n_layer
N_HEADS = 4          # n_head
HEAD_DIM = HIDDEN // N_HEADS
MAX_SEQ = 16         # n_positions
VOCAB = 128          # vocab_size
BATCH = 2
SEQ = 8
LN_EPS = 1e-5
NEG_INF = float(jnp.finfo(jnp.float32).min)   # HF GPT2 mask value (finfo.min)


# ------------------------------ in-kernel helpers ------------------------------
def _layernorm(v, g, b):
    mean = jnp.mean(v, axis=-1, keepdims=True)
    var = jnp.mean((v - mean) ** 2, axis=-1, keepdims=True)   # biased (torch LN)
    return (v - mean) * lax.rsqrt(var + LN_EPS) * g + b


def _gelu_new(v):
    # GPT-2 "gelu_new": 0.5*x*(1+tanh(sqrt(2/pi)*(x+0.044715*x^3)))
    return 0.5 * v * (1.0 + jnp.tanh(
        math.sqrt(2.0 / math.pi) * (v + 0.044715 * v * v * v)))


def _bf(v):
    return v.astype(jnp.bfloat16)


# --------------------------------- fused kernel --------------------------------
def _gpt2_fwd_kernel(h_ref, bias_ref, w_stack_ref, proj2_w_ref, wte_t_ref,
                     ln_pack_ref, wb_pack_ref, lnf_ref, logits_ref):
    M, H = h_ref.shape
    n_layers = w_stack_ref.shape[0]
    inv_sqrt_hd = 1.0 / math.sqrt(HEAD_DIM)

    x = h_ref[...]                 # [M, H] fp32 residual stream; vreg-resident
    bias = bias_ref[...]           # [M, M] block-diag causal + key-padding bias

    for l in range(n_layers):      # static unroll (N_LAYERS = 2)
        # packed per-layer parameters (all slices start at lane 0)
        ln1_g = ln_pack_ref[l, 0:1, :]
        ln1_b = ln_pack_ref[l, 1:2, :]
        ln2_g = ln_pack_ref[l, 2:3, :]
        ln2_b = ln_pack_ref[l, 3:4, :]
        attn_b = wb_pack_ref[l, 0:1, 0:3 * H]          # [1, 3H]
        fc_b = wb_pack_ref[l, 1:2, :]                  # [1, 4H]
        proj_b = wb_pack_ref[l, 2:3, 0:H]              # [1, H]
        proj2_b = wb_pack_ref[l, 3:4, 0:H]             # [1, H]
        attn_w = w_stack_ref[l, 0, :, 0:3 * H]         # bf16 [H, 3H]
        fc_w = w_stack_ref[l, 1, :, :]                 # bf16 [H, 4H]
        proj_w = w_stack_ref[l, 2, :, 0:H]             # bf16 [H, H]
        proj2_w = proj2_w_ref[l]                       # bf16 [4H, H]

        # ---------------- attention: LN1 -> QKV -> SDPA (all rows) -> proj -----
        ln1 = _layernorm(x, ln1_g, ln1_b)
        qkv = jnp.dot(_bf(ln1), attn_w,
                      preferred_element_type=jnp.float32) + attn_b   # [M, 3H]

        o_heads = []
        for hh in range(N_HEADS):                       # static unroll (4)
            c0 = hh * HEAD_DIM
            q = _bf(qkv[:, c0:c0 + HEAD_DIM])
            k = _bf(qkv[:, H + c0:H + c0 + HEAD_DIM])
            v = _bf(qkv[:, 2 * H + c0:2 * H + c0 + HEAD_DIM])
            # q @ k^T over ALL M rows, no transpose materialized
            s = lax.dot_general(q, k, (((1,), (1,)), ((), ())),
                                preferred_element_type=jnp.float32)  # [M, M]
            s = s * inv_sqrt_hd + bias
            m = jnp.max(s, axis=-1, keepdims=True)
            p = jnp.exp(s - m)
            denom = jnp.maximum(jnp.sum(p, axis=-1, keepdims=True), 1e-30)
            probs = _bf(p * pl.reciprocal(denom, approx=True))
            o_heads.append(jnp.dot(probs, v,
                                   preferred_element_type=jnp.float32))  # [M, HD]

        o_full = jnp.concatenate(o_heads, axis=-1)       # merge heads -> [M, H]
        x = x + jnp.dot(_bf(o_full), proj_w,
                        preferred_element_type=jnp.float32) + proj_b

        # ---------------- MLP: LN2 -> FC + gelu_new -> proj -> +residual -------
        ln2 = _layernorm(x, ln2_g, ln2_b)
        h1 = jnp.dot(_bf(ln2), fc_w,
                     preferred_element_type=jnp.float32) + fc_b       # [M, 4H]
        ff = _gelu_new(h1)
        x = x + jnp.dot(_bf(ff), proj2_w,
                        preferred_element_type=jnp.float32) + proj2_b

    # ---------- final LN + tied LM head (no bias); [16, 128] lane-dense --------
    xf = _layernorm(x, lnf_ref[0:1, :], lnf_ref[1:2, :])
    logits_ref[...] = jnp.dot(_bf(xf), wte_t_ref[...],
                              preferred_element_type=jnp.float32)


# ------------------------------ model (glue) -----------------------------------
def gpt2_forward(params, input_ids, attention_mask):
    B, S = input_ids.shape
    M = B * S

    # embeddings (gather is glue)
    h0 = (params["wte"][input_ids] + params["wpe"][:S][None, :, :]
          ).astype(jnp.float32).reshape(M, HIDDEN)

    # block-diagonal additive bias over flattened (batch*seq) rows/cols:
    # allowed iff same batch, causal, and key not padded; finfo.min otherwise.
    row = jnp.arange(M)
    same_batch = (row[:, None] // S) == (row[None, :] // S)
    causal = (row[None, :] % S) <= (row[:, None] % S)
    key_keep = (attention_mask.reshape(M) > 0)[None, :]
    keep = same_batch & causal & key_keep
    bias = jnp.where(keep, 0.0, NEG_INF).astype(jnp.float32)          # [M, M]

    logits = pl.pallas_call(
        _gpt2_fwd_kernel,
        out_shape=jax.ShapeDtypeStruct((M, VOCAB), jnp.float32),
    )(h0, bias,
      params["w_stack"], params["proj2_w"], params["wte_t"],
      params["ln_pack"], params["wb_pack"], params["lnf"])
    return logits.reshape(B, S, VOCAB)


# ------------------------------ parameter init ---------------------------------
def init_params(key):
    keys = jax.random.split(key, 2 + 4 * N_LAYERS)
    init = lambda k, shape: (0.02 * jax.random.normal(k, shape)).astype(jnp.float32)
    H = HIDDEN

    wte = init(keys[0], (VOCAB, H))
    wpe = init(keys[1], (MAX_SEQ, H))
    kw = keys[2:]

    attn_w = jnp.stack([init(kw[4 * i + 0], (H, 3 * H)) for i in range(N_LAYERS)])
    proj_w = jnp.stack([init(kw[4 * i + 1], (H, H)) for i in range(N_LAYERS)])
    fc_w = jnp.stack([init(kw[4 * i + 2], (H, 4 * H)) for i in range(N_LAYERS)])
    proj2_w = jnp.stack([init(kw[4 * i + 3], (4 * H, H)) for i in range(N_LAYERS)])

    # matmul weights: bf16, stacked on a sublane-clean axis, lane-padded to 4H
    pad_last = lambda a, width: jnp.pad(
        a, ((0, 0), (0, 0), (0, width - a.shape[-1])))
    w_stack = jnp.stack([
        pad_last(attn_w, 4 * H),      # row 0: c_attn  [H, 3H] (padded)
        fc_w,                         # row 1: c_fc    [H, 4H]
        pad_last(proj_w, 4 * H),      # row 2: c_proj  [H, H]  (padded)
    ], axis=1).astype(jnp.bfloat16)   # [L, 3, H, 4H]

    # bias vectors (zero at GPT-2 init), lane-padded and sublane-packed
    attn_b = jnp.zeros((N_LAYERS, 1, 3 * H), jnp.float32)
    fc_b = jnp.zeros((N_LAYERS, 1, 4 * H), jnp.float32)
    proj_b = jnp.zeros((N_LAYERS, 1, H), jnp.float32)
    proj2_b = jnp.zeros((N_LAYERS, 1, H), jnp.float32)
    wb_pack = jnp.concatenate([
        pad_last(attn_b, 4 * H), fc_b,
        pad_last(proj_b, 4 * H), pad_last(proj2_b, 4 * H)], axis=1)   # [L, 4, 4H]

    # LN gains/biases packed: rows = ln1_g, ln1_b, ln2_g, ln2_b
    ln_pack = jnp.stack([
        jnp.ones((N_LAYERS, H), jnp.float32),
        jnp.zeros((N_LAYERS, H), jnp.float32),
        jnp.ones((N_LAYERS, H), jnp.float32),
        jnp.zeros((N_LAYERS, H), jnp.float32),
    ], axis=1)                                                        # [L, 4, H]

    lnf = jnp.stack([jnp.ones((H,), jnp.float32),
                     jnp.zeros((H,), jnp.float32)], axis=0)           # [2, H]

    return {
        "wte": wte,
        "wpe": wpe,
        "wte_t": wte.T.astype(jnp.bfloat16),   # tied LM head, transposed once
        "w_stack": w_stack,
        "proj2_w": proj2_w.astype(jnp.bfloat16),
        "wb_pack": wb_pack,
        "ln_pack": ln_pack,
        "lnf": lnf,
    }


# ----------------------------------- main ---------------------------------------
if __name__ == "__main__":
    key = jax.random.PRNGKey(0)
    pkey, ikey = jax.random.split(key)

    params = init_params(pkey)
    input_ids = jax.random.randint(ikey, (BATCH, SEQ), 0, VOCAB, dtype=jnp.int32)
    attention_mask = jnp.ones((BATCH, SEQ), dtype=jnp.int32)

    fwd = jax.jit(gpt2_forward)
    logits = jax.block_until_ready(fwd(params, input_ids, attention_mask))

    assert logits.shape == (BATCH, SEQ, VOCAB), logits.shape
    assert logits.dtype == jnp.float32
    assert bool(jnp.all(jnp.isfinite(logits)))
    print("KERNEL_OK")
</pallas_src>

<mosaic_0001>
module attributes {stable_mosaic.version = 11 : i64} {
  func.func @_gpt2_fwd_kernel(%arg0: memref<16x32xf32, #tpu.memory_space<vmem>>, %arg1: memref<16x16xf32, #tpu.memory_space<vmem>>, %arg2: memref<2x3x32x128xbf16, #tpu.memory_space<vmem>>, %arg3: memref<2x128x32xbf16, #tpu.memory_space<vmem>>, %arg4: memref<32x128xbf16, #tpu.memory_space<vmem>>, %arg5: memref<2x4x32xf32, #tpu.memory_space<vmem>>, %arg6: memref<2x4x128xf32, #tpu.memory_space<vmem>>, %arg7: memref<2x32xf32, #tpu.memory_space<vmem>>, %arg8: memref<16x128xf32, #tpu.memory_space<vmem>>) attributes {dimension_semantics = [], scalar_prefetch = 0 : i64, scratch_operands = 0 : i64, tpu.core_type = #tpu.core_type<tc>} {
    %c0 = arith.constant 0 : index
    %c0_0 = arith.constant 0 : index
    %0 = vector.load %arg0[%c0, %c0_0] : memref<16x32xf32, #tpu.memory_space<vmem>>, vector<16x32xf32>
    %c0_1 = arith.constant 0 : index
    %c0_2 = arith.constant 0 : index
    %1 = vector.load %arg1[%c0_1, %c0_2] : memref<16x16xf32, #tpu.memory_space<vmem>>, vector<16x16xf32>
    %c0_3 = arith.constant 0 : index
    %c0_4 = arith.constant 0 : index
    %c0_5 = arith.constant 0 : index
    %2 = vector.load %arg5[%c0_3, %c0_4, %c0_5] : memref<2x4x32xf32, #tpu.memory_space<vmem>>, vector<1x1x32xf32>
    %3 = vector.shape_cast %2 : vector<1x1x32xf32> to vector<1x32xf32>
    %c0_6 = arith.constant 0 : index
    %c1 = arith.constant 1 : index
    %c0_7 = arith.constant 0 : index
    %4 = vector.load %arg5[%c0_6, %c1, %c0_7] : memref<2x4x32xf32, #tpu.memory_space<vmem>>, vector<1x1x32xf32>
    %5 = vector.shape_cast %4 : vector<1x1x32xf32> to vector<1x32xf32>
    %c0_8 = arith.constant 0 : index
    %c2 = arith.constant 2 : index
    %c0_9 = arith.constant 0 : index
    %6 = vector.load %arg5[%c0_8, %c2, %c0_9] : memref<2x4x32xf32, #tpu.memory_space<vmem>>, vector<1x1x32xf32>
    %7 = vector.shape_cast %6 : vector<1x1x32xf32> to vector<1x32xf32>
    %c0_10 = arith.constant 0 : index
    %c3 = arith.constant 3 : index
    %c0_11 = arith.constant 0 : index
    %8 = vector.load %arg5[%c0_10, %c3, %c0_11] : memref<2x4x32xf32, #tpu.memory_space<vmem>>, vector<1x1x32xf32>
    %9 = vector.shape_cast %8 : vector<1x1x32xf32> to vector<1x32xf32>
    %c0_12 = arith.constant 0 : index
    %c0_13 = arith.constant 0 : index
    %c0_14 = arith.constant 0 : index
    %10 = vector.load %arg6[%c0_12, %c0_13, %c0_14] : memref<2x4x128xf32, #tpu.memory_space<vmem>>, vector<1x1x96xf32>
    %11 = vector.shape_cast %10 : vector<1x1x96xf32> to vector<1x96xf32>
    %c0_15 = arith.constant 0 : index
    %c1_16 = arith.constant 1 : index
    %c0_17 = arith.constant 0 : index
    %12 = vector.load %arg6[%c0_15, %c1_16, %c0_17] : memref<2x4x128xf32, #tpu.memory_space<vmem>>, vector<1x1x128xf32>
    %13 = vector.shape_cast %12 : vector<1x1x128xf32> to vector<1x128xf32>
    %c0_18 = arith.constant 0 : index
    %c2_19 = arith.constant 2 : index
    %c0_20 = arith.constant 0 : index
    %14 = vector.load %arg6[%c0_18, %c2_19, %c0_20] : memref<2x4x128xf32, #tpu.memory_space<vmem>>, vector<1x1x32xf32>
    %15 = vector.shape_cast %14 : vector<1x1x32xf32> to vector<1x32xf32>
    %c0_21 = arith.constant 0 : index
    %c3_22 = arith.constant 3 : index
    %c0_23 = arith.constant 0 : index
    %16 = vector.load %arg6[%c0_21, %c3_22, %c0_23] : memref<2x4x128xf32, #tpu.memory_space<vmem>>, vector<1x1x32xf32>
    %17 = vector.shape_cast %16 : vector<1x1x32xf32> to vector<1x32xf32>
    %c0_24 = arith.constant 0 : index
    %c0_25 = arith.constant 0 : index
    %c0_26 = arith.constant 0 : index
    %c0_27 = arith.constant 0 : index
    %18 = vector.load %arg2[%c0_24, %c0_25, %c0_26, %c0_27] : memref<2x3x32x128xbf16, #tpu.memory_space<vmem>>, vector<1x1x32x96xbf16>
    %19 = vector.shape_cast %18 : vector<1x1x32x96xbf16> to vector<32x96xbf16>
    %c0_28 = arith.constant 0 : index
    %c1_29 = arith.constant 1 : index
    %c0_30 = arith.constant 0 : index
    %c0_31 = arith.constant 0 : index
    %20 = vector.load %arg2[%c0_28, %c1_29, %c0_30, %c0_31] : memref<2x3x32x128xbf16, #tpu.memory_space<vmem>>, vector<1x1x32x128xbf16>
    %21 = vector.shape_cast %20 : vector<1x1x32x128xbf16> to vector<32x128xbf16>
    %c0_32 = arith.constant 0 : index
    %c2_33 = arith.constant 2 : index
    %c0_34 = arith.constant 0 : index
    %c0_35 = arith.constant 0 : index
    %22 = vector.load %arg2[%c0_32, %c2_33, %c0_34, %c0_35] : memref<2x3x32x128xbf16, #tpu.memory_space<vmem>>, vector<1x1x32x32xbf16>
    %23 = vector.shape_cast %22 : vector<1x1x32x32xbf16> to vector<32x32xbf16>
    %c0_36 = arith.constant 0 : index
    %c0_37 = arith.constant 0 : index
    %c0_38 = arith.constant 0 : index
    %24 = vector.load %arg3[%c0_36, %c0_37, %c0_38] : memref<2x128x32xbf16, #tpu.memory_space<vmem>>, vector<1x128x32xbf16>
    %25 = vector.shape_cast %24 : vector<1x128x32xbf16> to vector<128x32xbf16>
    %cst = arith.constant dense<0.000000e+00> : vector<16xf32>
    %26 = vector.multi_reduction <add>, %0, %cst [1] : vector<16x32xf32> to vector<16xf32>
    %27 = vector.shape_cast %26 : vector<16xf32> to vector<16x1xf32>
    %cst_39 = arith.constant 3.200000e+01 : f32
    %28 = vector.broadcast %cst_39 : f32 to vector<16x1xf32>
    %29 = arith.divf %27, %28 : vector<16x1xf32>
    %30 = vector.broadcast %29 : vector<16x1xf32> to vector<16x32xf32>
    %31 = arith.subf %0, %30 : vector<16x32xf32>
    %32 = arith.mulf %31, %31 : vector<16x32xf32>
    %cst_40 = arith.constant dense<0.000000e+00> : vector<16xf32>
    %33 = vector.multi_reduction <add>, %32, %cst_40 [1] : vector<16x32xf32> to vector<16xf32>
    %34 = vector.shape_cast %33 : vector<16xf32> to vector<16x1xf32>
    %cst_41 = arith.constant 3.200000e+01 : f32
    %35 = vector.broadcast %cst_41 : f32 to vector<16x1xf32>
    %36 = arith.divf %34, %35 : vector<16x1xf32>
    %37 = vector.broadcast %29 : vector<16x1xf32> to vector<16x32xf32>
    %38 = arith.subf %0, %37 : vector<16x32xf32>
    %cst_42 = arith.constant 9.99999974E-6 : f32
    %39 = vector.broadcast %cst_42 : f32 to vector<16x1xf32>
    %40 = arith.addf %36, %39 : vector<16x1xf32>
    %41 = math.rsqrt %40 : vector<16x1xf32>
    %42 = vector.broadcast %41 : vector<16x1xf32> to vector<16x32xf32>
    %43 = arith.mulf %38, %42 : vector<16x32xf32>
    %44 = vector.broadcast %3 : vector<1x32xf32> to vector<16x32xf32>
    %45 = arith.mulf %43, %44 : vector<16x32xf32>
    %46 = vector.broadcast %5 : vector<1x32xf32> to vector<16x32xf32>
    %47 = arith.addf %45, %46 : vector<16x32xf32>
    %48 = arith.truncf %47 : vector<16x32xf32> to vector<16x32xbf16>
    %cst_43 = arith.constant dense<0.000000e+00> : vector<16x96xf32>
    %49 = tpu.matmul %48, %19, %cst_43 {dimension_numbers = #tpu.dot_dimension_numbers<[1], [0], [0], [1], [0, 0, 1, 1], [], []>} : vector<16x32xbf16>, vector<32x96xbf16>, vector<16x96xf32> -> vector<16x96xf32>
    %50 = vector.broadcast %11 : vector<1x96xf32> to vector<16x96xf32>
    %51 = arith.addf %49, %50 : vector<16x96xf32>
    %52 = vector.extract_strided_slice %51 {offsets = [0, 0], sizes = [16, 8], strides = [1, 1]} : vector<16x96xf32> to vector<16x8xf32>
    %53 = arith.truncf %52 : vector<16x8xf32> to vector<16x8xbf16>
    %54 = vector.extract_strided_slice %51 {offsets = [0, 32], sizes = [16, 8], strides = [1, 1]} : vector<16x96xf32> to vector<16x8xf32>
    %55 = arith.truncf %54 : vector<16x8xf32> to vector<16x8xbf16>
    %56 = vector.extract_strided_slice %51 {offsets = [0, 64], sizes = [16, 8], strides = [1, 1]} : vector<16x96xf32> to vector<16x8xf32>
    %57 = arith.truncf %56 : vector<16x8xf32> to vector<16x8xbf16>
    %cst_44 = arith.constant dense<0.000000e+00> : vector<16x16xf32>
    %58 = tpu.matmul %53, %55, %cst_44 {dimension_numbers = #tpu.dot_dimension_numbers<[1], [1], [0], [0], [0, 0, 1, 0], [], []>} : vector<16x8xbf16>, vector<16x8xbf16>, vector<16x16xf32> -> vector<16x16xf32>
    %cst_45 = arith.constant 0.353553385 : f32
    %59 = vector.broadcast %cst_45 : f32 to vector<16x16xf32>
    %60 = arith.mulf %58, %59 : vector<16x16xf32>
    %61 = arith.addf %60, %1 : vector<16x16xf32>
    %cst_46 = arith.constant dense<0xFF800000> : vector<16xf32>
    %62 = vector.multi_reduction <maximumf>, %61, %cst_46 [1] : vector<16x16xf32> to vector<16xf32>
    %63 = vector.shape_cast %62 : vector<16xf32> to vector<16x1xf32>
    %64 = vector.broadcast %63 : vector<16x1xf32> to vector<16x16xf32>
    %65 = arith.subf %61, %64 : vector<16x16xf32>
    %66 = math.exp %65 : vector<16x16xf32>
    %cst_47 = arith.constant dense<0.000000e+00> : vector<16xf32>
    %67 = vector.multi_reduction <add>, %66, %cst_47 [1] : vector<16x16xf32> to vector<16xf32>
    %68 = vector.shape_cast %67 : vector<16xf32> to vector<16x1xf32>
    %cst_48 = arith.constant 1.000000e-30 : f32
    %69 = vector.broadcast %cst_48 : f32 to vector<16x1xf32>
    %70 = arith.maximumf %68, %69 : vector<16x1xf32>
    %71 = tpu.reciprocal %70 {approx = true} : vector<16x1xf32> -> vector<16x1xf32>
    %72 = vector.broadcast %71 : vector<16x1xf32> to vector<16x16xf32>
    %73 = arith.mulf %66, %72 : vector<16x16xf32>
    %74 = arith.truncf %73 : vector<16x16xf32> to vector<16x16xbf16>
    %cst_49 = arith.constant dense<0.000000e+00> : vector<16x8xf32>
    %75 = tpu.matmul %74, %57, %cst_49 {dimension_numbers = #tpu.dot_dimension_numbers<[1], [0], [0], [1], [0, 0, 1, 1], [], []>} : vector<16x16xbf16>, vector<16x8xbf16>, vector<16x8xf32> -> vector<16x8xf32>
    %76 = vector.extract_strided_slice %51 {offsets = [0, 8], sizes = [16, 8], strides = [1, 1]} : vector<16x96xf32> to vector<16x8xf32>
    %77 = arith.truncf %76 : vector<16x8xf32> to vector<16x8xbf16>
    %78 = vector.extract_strided_slice %51 {offsets = [0, 40], sizes = [16, 8], strides = [1, 1]} : vector<16x96xf32> to vector<16x8xf32>
    %79 = arith.truncf %78 : vector<16x8xf32> to vector<16x8xbf16>
    %80 = vector.extract_strided_slice %51 {offsets = [0, 72], sizes = [16, 8], strides = [1, 1]} : vector<16x96xf32> to vector<16x8xf32>
    %81 = arith.truncf %80 : vector<16x8xf32> to vector<16x8xbf16>
    %cst_50 = arith.constant dense<0.000000e+00> : vector<16x16xf32>
    %82 = tpu.matmul %77, %79, %cst_50 {dimension_numbers = #tpu.dot_dimension_numbers<[1], [1], [0], [0], [0, 0, 1, 0], [], []>} : vector<16x8xbf16>, vector<16x8xbf16>, vector<16x16xf32> -> vector<16x16xf32>
    %cst_51 = arith.constant 0.353553385 : f32
    %83 = vector.broadcast %cst_51 : f32 to vector<16x16xf32>
    %84 = arith.mulf %82, %83 : vector<16x16xf32>
    %85 = arith.addf %84, %1 : vector<16x16xf32>
    %cst_52 = arith.constant dense<0xFF800000> : vector<16xf32>
    %86 = vector.multi_reduction <maximumf>, %85, %cst_52 [1] : vector<16x16xf32> to vector<16xf32>
    %87 = vector.shape_cast %86 : vector<16xf32> to vector<16x1xf32>
    %88 = vector.broadcast %87 : vector<16x1xf32> to vector<16x16xf32>
    %89 = arith.subf %85, %88 : vector<16x16xf32>
    %90 = math.exp %89 : vector<16x16xf32>
    %cst_53 = arith.constant dense<0.000000e+00> : vector<16xf32>
    %91 = vector.multi_reduction <add>, %90, %cst_53 [1] : vector<16x16xf32> to vector<16xf32>
    %92 = vector.shape_cast %91 : vector<16xf32> to vector<16x1xf32>
    %cst_54 = arith.constant 1.000000e-30 : f32
    %93 = vector.broadcast %cst_54 : f32 to vector<16x1xf32>
    %94 = arith.maximumf %92, %93 : vector<16x1xf32>
    %95 = tpu.reciprocal %94 {approx = true} : vector<16x1xf32> -> vector<16x1xf32>
    %96 = vector.broadcast %95 : vector<16x1xf32> to vector<16x16xf32>
    %97 = arith.mulf %90, %96 : vector<16x16xf32>
    %98 = arith.truncf %97 : vector<16x16xf32> to vector<16x16xbf16>
    %cst_55 = arith.constant dense<0.000000e+00> : vector<16x8xf32>
    %99 = tpu.matmul %98, %81, %cst_55 {dimension_numbers = #tpu.dot_dimension_numbers<[1], [0], [0], [1], [0, 0, 1, 1], [], []>} : vector<16x16xbf16>, vector<16x8xbf16>, vector<16x8xf32> -> vector<16x8xf32>
    %100 = vector.extract_strided_slice %51 {offsets = [0, 16], sizes = [16, 8], strides = [1, 1]} : vector<16x96xf32> to vector<16x8xf32>
    %101 = arith.truncf %100 : vector<16x8xf32> to vector<16x8xbf16>
    %102 = vector.extract_strided_slice %51 {offsets = [0, 48], sizes = [16, 8], strides = [1, 1]} : vector<16x96xf32> to vector<16x8xf32>
    %103 = arith.truncf %102 : vector<16x8xf32> to vector<16x8xbf16>
    %104 = vector.extract_strided_slice %51 {offsets = [0, 80], sizes = [16, 8], strides = [1, 1]} : vector<16x96xf32> to vector<16x8xf32>
    %105 = arith.truncf %104 : vector<16x8xf32> to vector<16x8xbf16>
    %cst_56 = arith.constant dense<0.000000e+00> : vector<16x16xf32>
    %106 = tpu.matmul %101, %103, %cst_56 {dimension_numbers = #tpu.dot_dimension_numbers<[1], [1], [0], [0], [0, 0, 1, 0], [], []>} : vector<16x8xbf16>, vector<16x8xbf16>, vector<16x16xf32> -> vector<16x16xf32>
    %cst_57 = arith.constant 0.353553385 : f32
    %107 = vector.broadcast %cst_57 : f32 to vector<16x16xf32>
    %108 = arith.mulf %106, %107 : vector<16x16xf32>
    %109 = arith.addf %108, %1 : vector<16x16xf32>
    %cst_58 = arith.constant dense<0xFF800000> : vector<16xf32>
    %110 = vector.multi_reduction <maximumf>, %109, %cst_58 [1] : vector<16x16xf32> to vector<16xf32>
    %111 = vector.shape_cast %110 : vector<16xf32> to vector<16x1xf32>
    %112 = vector.broadcast %111 : vector<16x1xf32> to vector<16x16xf32>
    %113 = arith.subf %109, %112 : vector<16x16xf32>
    %114 = math.exp %113 : vector<16x16xf32>
    %cst_59 = arith.constant dense<0.000000e+00> : vector<16xf32>
    %115 = vector.multi_reduction <add>, %114, %cst_59 [1] : vector<16x16xf32> to vector<16xf32>
    %116 = vector.shape_cast %115 : vector<16xf32> to vector<16x1xf32>
    %cst_60 = arith.constant 1.000000e-30 : f32
    %117 = vector.broadcast %cst_60 : f32 to vector<16x1xf32>
    %118 = arith.maximumf %116, %117 : vector<16x1xf32>
    %119 = tpu.reciprocal %118 {approx = true} : vector<16x1xf32> -> vector<16x1xf32>
    %120 = vector.broadcast %119 : vector<16x1xf32> to vector<16x16xf32>
    %121 = arith.mulf %114, %120 : vector<16x16xf32>
    %122 = arith.truncf %121 : vector<16x16xf32> to vector<16x16xbf16>
    %cst_61 = arith.constant dense<0.000000e+00> : vector<16x8xf32>
    %123 = tpu.matmul %122, %105, %cst_61 {dimension_numbers = #tpu.dot_dimension_numbers<[1], [0], [0], [1], [0, 0, 1, 1], [], []>} : vector<16x16xbf16>, vector<16x8xbf16>, vector<16x8xf32> -> vector<16x8xf32>
    %124 = vector.extract_strided_slice %51 {offsets = [0, 24], sizes = [16, 8], strides = [1, 1]} : vector<16x96xf32> to vector<16x8xf32>
    %125 = arith.truncf %124 : vector<16x8xf32> to vector<16x8xbf16>
    %126 = vector.extract_strided_slice %51 {offsets = [0, 56], sizes = [16, 8], strides = [1, 1]} : vector<16x96xf32> to vector<16x8xf32>
    %127 = arith.truncf %126 : vector<16x8xf32> to vector<16x8xbf16>
    %128 = vector.extract_strided_slice %51 {offsets = [0, 88], sizes = [16, 8], strides = [1, 1]} : vector<16x96xf32> to vector<16x8xf32>
    %129 = arith.truncf %128 : vector<16x8xf32> to vector<16x8xbf16>
    %cst_62 = arith.constant dense<0.000000e+00> : vector<16x16xf32>
    %130 = tpu.matmul %125, %127, %cst_62 {dimension_numbers = #tpu.dot_dimension_numbers<[1], [1], [0], [0], [0, 0, 1, 0], [], []>} : vector<16x8xbf16>, vector<16x8xbf16>, vector<16x16xf32> -> vector<16x16xf32>
    %cst_63 = arith.constant 0.353553385 : f32
    %131 = vector.broadcast %cst_63 : f32 to vector<16x16xf32>
    %132 = arith.mulf %130, %131 : vector<16x16xf32>
    %133 = arith.addf %132, %1 : vector<16x16xf32>
    %cst_64 = arith.constant dense<0xFF800000> : vector<16xf32>
    %134 = vector.multi_reduction <maximumf>, %133, %cst_64 [1] : vector<16x16xf32> to vector<16xf32>
    %135 = vector.shape_cast %134 : vector<16xf32> to vector<16x1xf32>
    %136 = vector.broadcast %135 : vector<16x1xf32> to vector<16x16xf32>
    %137 = arith.subf %133, %136 : vector<16x16xf32>
    %138 = math.exp %137 : vector<16x16xf32>
    %cst_65 = arith.constant dense<0.000000e+00> : vector<16xf32>
    %139 = vector.multi_reduction <add>, %138, %cst_65 [1] : vector<16x16xf32> to vector<16xf32>
    %140 = vector.shape_cast %139 : vector<16xf32> to vector<16x1xf32>
    %cst_66 = arith.constant 1.000000e-30 : f32
    %141 = vector.broadcast %cst_66 : f32 to vector<16x1xf32>
    %142 = arith.maximumf %140, %141 : vector<16x1xf32>
    %143 = tpu.reciprocal %142 {approx = true} : vector<16x1xf32> -> vector<16x1xf32>
    %144 = vector.broadcast %143 : vector<16x1xf32> to vector<16x16xf32>
    %145 = arith.mulf %138, %144 : vector<16x16xf32>
    %146 = arith.truncf %145 : vector<16x16xf32> to vector<16x16xbf16>
    %cst_67 = arith.constant dense<0.000000e+00> : vector<16x8xf32>
    %147 = tpu.matmul %146, %129, %cst_67 {dimension_numbers = #tpu.dot_dimension_numbers<[1], [0], [0], [1], [0, 0, 1, 1], [], []>} : vector<16x16xbf16>, vector<16x8xbf16>, vector<16x8xf32> -> vector<16x8xf32>
    %148 = tpu.concatenate %75, %99, %123, %147 in 1 : vector<16x8xf32>, vector<16x8xf32>, vector<16x8xf32>, vector<16x8xf32> -> vector<16x32xf32>
    %149 = arith.truncf %148 : vector<16x32xf32> to vector<16x32xbf16>
    %cst_68 = arith.constant dense<0.000000e+00> : vector<16x32xf32>
    %150 = tpu.matmul %149, %23, %cst_68 {dimension_numbers = #tpu.dot_dimension_numbers<[1], [0], [0], [1], [0, 0, 1, 1], [], []>} : vector<16x32xbf16>, vector<32x32xbf16>, vector<16x32xf32> -> vector<16x32xf32>
    %151 = arith.addf %0, %150 : vector<16x32xf32>
    %152 = vector.broadcast %15 : vector<1x32xf32> to vector<16x32xf32>
    %153 = arith.addf %151, %152 : vector<16x32xf32>
    %cst_69 = arith.constant dense<0.000000e+00> : vector<16xf32>
    %154 = vector.multi_reduction <add>, %153, %cst_69 [1] : vector<16x32xf32> to vector<16xf32>
    %155 = vector.shape_cast %154 : vector<16xf32> to vector<16x1xf32>
    %cst_70 = arith.constant 3.200000e+01 : f32
    %156 = vector.broadcast %cst_70 : f32 to vector<16x1xf32>
    %157 = arith.divf %155, %156 : vector<16x1xf32>
    %158 = vector.broadcast %157 : vector<16x1xf32> to vector<16x32xf32>
    %159 = arith.subf %153, %158 : vector<16x32xf32>
    %160 = arith.mulf %159, %159 : vector<16x32xf32>
    %cst_71 = arith.constant dense<0.000000e+00> : vector<16xf32>
    %161 = vector.multi_reduction <add>, %160, %cst_71 [1] : vector<16x32xf32> to vector<16xf32>
    %162 = vector.shape_cast %161 : vector<16xf32> to vector<16x1xf32>
    %cst_72 = arith.constant 3.200000e+01 : f32
    %163 = vector.broadcast %cst_72 : f32 to vector<16x1xf32>
    %164 = arith.divf %162, %163 : vector<16x1xf32>
    %165 = vector.broadcast %157 : vector<16x1xf32> to vector<16x32xf32>
    %166 = arith.subf %153, %165 : vector<16x32xf32>
    %cst_73 = arith.constant 9.99999974E-6 : f32
    %167 = vector.broadcast %cst_73 : f32 to vector<16x1xf32>
    %168 = arith.addf %164, %167 : vector<16x1xf32>
    %169 = math.rsqrt %168 : vector<16x1xf32>
    %170 = vector.broadcast %169 : vector<16x1xf32> to vector<16x32xf32>
    %171 = arith.mulf %166, %170 : vector<16x32xf32>
    %172 = vector.broadcast %7 : vector<1x32xf32> to vector<16x32xf32>
    %173 = arith.mulf %171, %172 : vector<16x32xf32>
    %174 = vector.broadcast %9 : vector<1x32xf32> to vector<16x32xf32>
    %175 = arith.addf %173, %174 : vector<16x32xf32>
    %176 = arith.truncf %175 : vector<16x32xf32> to vector<16x32xbf16>
    %cst_74 = arith.constant dense<0.000000e+00> : vector<16x128xf32>
    %177 = tpu.matmul %176, %21, %cst_74 {dimension_numbers = #tpu.dot_dimension_numbers<[1], [0], [0], [1], [0, 0, 1, 1], [], []>} : vector<16x32xbf16>, vector<32x128xbf16>, vector<16x128xf32> -> vector<16x128xf32>
    %178 = vector.broadcast %13 : vector<1x128xf32> to vector<16x128xf32>
    %179 = arith.addf %177, %178 : vector<16x128xf32>
    %cst_75 = arith.constant 5.000000e-01 : f32
    %180 = vector.broadcast %cst_75 : f32 to vector<16x128xf32>
    %181 = arith.mulf %180, %179 : vector<16x128xf32>
    %cst_76 = arith.constant 4.471500e-02 : f32
    %182 = vector.broadcast %cst_76 : f32 to vector<16x128xf32>
    %183 = arith.mulf %182, %179 : vector<16x128xf32>
    %184 = arith.mulf %183, %179 : vector<16x128xf32>
    %185 = arith.mulf %184, %179 : vector<16x128xf32>
    %186 = arith.addf %179, %185 : vector<16x128xf32>
    %cst_77 = arith.constant 0.797884583 : f32
    %187 = vector.broadcast %cst_77 : f32 to vector<16x128xf32>
    %188 = arith.mulf %187, %186 : vector<16x128xf32>
    %189 = math.tanh %188 : vector<16x128xf32>
    %cst_78 = arith.constant 1.000000e+00 : f32
    %190 = vector.broadcast %cst_78 : f32 to vector<16x128xf32>
    %191 = arith.addf %190, %189 : vector<16x128xf32>
    %192 = arith.mulf %181, %191 : vector<16x128xf32>
    %193 = arith.truncf %192 : vector<16x128xf32> to vector<16x128xbf16>
    %cst_79 = arith.constant dense<0.000000e+00> : vector<16x32xf32>
    %194 = tpu.matmul %193, %25, %cst_79 {dimension_numbers = #tpu.dot_dimension_numbers<[1], [0], [0], [1], [0, 0, 1, 1], [], []>} : vector<16x128xbf16>, vector<128x32xbf16>, vector<16x32xf32> -> vector<16x32xf32>
    %195 = arith.addf %153, %194 : vector<16x32xf32>
    %196 = vector.broadcast %17 : vector<1x32xf32> to vector<16x32xf32>
    %197 = arith.addf %195, %196 : vector<16x32xf32>
    %c1_80 = arith.constant 1 : index
    %c0_81 = arith.constant 0 : index
    %c0_82 = arith.constant 0 : index
    %198 = vector.load %arg5[%c1_80, %c0_81, %c0_82] : memref<2x4x32xf32, #tpu.memory_space<vmem>>, vector<1x1x32xf32>
    %199 = vector.shape_cast %198 : vector<1x1x32xf32> to vector<1x32xf32>
    %c1_83 = arith.constant 1 : index
    %c1_84 = arith.constant 1 : index
    %c0_85 = arith.constant 0 : index
    %200 = vector.load %arg5[%c1_83, %c1_84, %c0_85] : memref<2x4x32xf32, #tpu.memory_space<vmem>>, vector<1x1x32xf32>
    %201 = vector.shape_cast %200 : vector<1x1x32xf32> to vector<1x32xf32>
    %c1_86 = arith.constant 1 : index
    %c2_87 = arith.constant 2 : index
    %c0_88 = arith.constant 0 : index
    %202 = vector.load %arg5[%c1_86, %c2_87, %c0_88] : memref<2x4x32xf32, #tpu.memory_space<vmem>>, vector<1x1x32xf32>
    %203 = vector.shape_cast %202 : vector<1x1x32xf32> to vector<1x32xf32>
    %c1_89 = arith.constant 1 : index
    %c3_90 = arith.constant 3 : index
    %c0_91 = arith.constant 0 : index
    %204 = vector.load %arg5[%c1_89, %c3_90, %c0_91] : memref<2x4x32xf32, #tpu.memory_space<vmem>>, vector<1x1x32xf32>
    %205 = vector.shape_cast %204 : vector<1x1x32xf32> to vector<1x32xf32>
    %c1_92 = arith.constant 1 : index
    %c0_93 = arith.constant 0 : index
    %c0_94 = arith.constant 0 : index
    %206 = vector.load %arg6[%c1_92, %c0_93, %c0_94] : memref<2x4x128xf32, #tpu.memory_space<vmem>>, vector<1x1x96xf32>
    %207 = vector.shape_cast %206 : vector<1x1x96xf32> to vector<1x96xf32>
    %c1_95 = arith.constant 1 : index
    %c1_96 = arith.constant 1 : index
    %c0_97 = arith.constant 0 : index
    %208 = vector.load %arg6[%c1_95, %c1_96, %c0_97] : memref<2x4x128xf32, #tpu.memory_space<vmem>>, vector<1x1x128xf32>
    %209 = vector.shape_cast %208 : vector<1x1x128xf32> to vector<1x128xf32>
    %c1_98 = arith.constant 1 : index
    %c2_99 = arith.constant 2 : index
    %c0_100 = arith.constant 0 : index
    %210 = vector.load %arg6[%c1_98, %c2_99, %c0_100] : memref<2x4x128xf32, #tpu.memory_space<vmem>>, vector<1x1x32xf32>
    %211 = vector.shape_cast %210 : vector<1x1x32xf32> to vector<1x32xf32>
    %c1_101 = arith.constant 1 : index
    %c3_102 = arith.constant 3 : index
    %c0_103 = arith.constant 0 : index
    %212 = vector.load %arg6[%c1_101, %c3_102, %c0_103] : memref<2x4x128xf32, #tpu.memory_space<vmem>>, vector<1x1x32xf32>
    %213 = vector.shape_cast %212 : vector<1x1x32xf32> to vector<1x32xf32>
    %c1_104 = arith.constant 1 : index
    %c0_105 = arith.constant 0 : index
    %c0_106 = arith.constant 0 : index
    %c0_107 = arith.constant 0 : index
    %214 = vector.load %arg2[%c1_104, %c0_105, %c0_106, %c0_107] : memref<2x3x32x128xbf16, #tpu.memory_space<vmem>>, vector<1x1x32x96xbf16>
    %215 = vector.shape_cast %214 : vector<1x1x32x96xbf16> to vector<32x96xbf16>
    %c1_108 = arith.constant 1 : index
    %c1_109 = arith.constant 1 : index
    %c0_110 = arith.constant 0 : index
    %c0_111 = arith.constant 0 : index
    %216 = vector.load %arg2[%c1_108, %c1_109, %c0_110, %c0_111] : memref<2x3x32x128xbf16, #tpu.memory_space<vmem>>, vector<1x1x32x128xbf16>
    %217 = vector.shape_cast %216 : vector<1x1x32x128xbf16> to vector<32x128xbf16>
    %c1_112 = arith.constant 1 : index
    %c2_113 = arith.constant 2 : index
    %c0_114 = arith.constant 0 : index
    %c0_115 = arith.constant 0 : index
    %218 = vector.load %arg2[%c1_112, %c2_113, %c0_114, %c0_115] : memref<2x3x32x128xbf16, #tpu.memory_space<vmem>>, vector<1x1x32x32xbf16>
    %219 = vector.shape_cast %218 : vector<1x1x32x32xbf16> to vector<32x32xbf16>
    %c1_116 = arith.constant 1 : index
    %c0_117 = arith.constant 0 : index
    %c0_118 = arith.constant 0 : index
    %220 = vector.load %arg3[%c1_116, %c0_117, %c0_118] : memref<2x128x32xbf16, #tpu.memory_space<vmem>>, vector<1x128x32xbf16>
    %221 = vector.shape_cast %220 : vector<1x128x32xbf16> to vector<128x32xbf16>
    %cst_119 = arith.constant dense<0.000000e+00> : vector<16xf32>
    %222 = vector.multi_reduction <add>, %197, %cst_119 [1] : vector<16x32xf32> to vector<16xf32>
    %223 = vector.shape_cast %222 : vector<16xf32> to vector<16x1xf32>
    %cst_120 = arith.constant 3.200000e+01 : f32
    %224 = vector.broadcast %cst_120 : f32 to vector<16x1xf32>
    %225 = arith.divf %223, %224 : vector<16x1xf32>
    %226 = vector.broadcast %225 : vector<16x1xf32> to vector<16x32xf32>
    %227 = arith.subf %197, %226 : vector<16x32xf32>
    %228 = arith.mulf %227, %227 : vector<16x32xf32>
    %cst_121 = arith.constant dense<0.000000e+00> : vector<16xf32>
    %229 = vector.multi_reduction <add>, %228, %cst_121 [1] : vector<16x32xf32> to vector<16xf32>
    %230 = vector.shape_cast %229 : vector<16xf32> to vector<16x1xf32>
    %cst_122 = arith.constant 3.200000e+01 : f32
    %231 = vector.broadcast %cst_122 : f32 to vector<16x1xf32>
    %232 = arith.divf %230, %231 : vector<16x1xf32>
    %233 = vector.broadcast %225 : vector<16x1xf32> to vector<16x32xf32>
    %234 = arith.subf %197, %233 : vector<16x32xf32>
    %cst_123 = arith.constant 9.99999974E-6 : f32
    %235 = vector.broadcast %cst_123 : f32 to vector<16x1xf32>
    %236 = arith.addf %232, %235 : vector<16x1xf32>
    %237 = math.rsqrt %236 : vector<16x1xf32>
    %238 = vector.broadcast %237 : vector<16x1xf32> to vector<16x32xf32>
    %239 = arith.mulf %234, %238 : vector<16x32xf32>
    %240 = vector.broadcast %199 : vector<1x32xf32> to vector<16x32xf32>
    %241 = arith.mulf %239, %240 : vector<16x32xf32>
    %242 = vector.broadcast %201 : vector<1x32xf32> to vector<16x32xf32>
    %243 = arith.addf %241, %242 : vector<16x32xf32>
    %244 = arith.truncf %243 : vector<16x32xf32> to vector<16x32xbf16>
    %cst_124 = arith.constant dense<0.000000e+00> : vector<16x96xf32>
    %245 = tpu.matmul %244, %215, %cst_124 {dimension_numbers = #tpu.dot_dimension_numbers<[1], [0], [0], [1], [0, 0, 1, 1], [], []>} : vector<16x32xbf16>, vector<32x96xbf16>, vector<16x96xf32> -> vector<16x96xf32>
    %246 = vector.broadcast %207 : vector<1x96xf32> to vector<16x96xf32>
    %247 = arith.addf %245, %246 : vector<16x96xf32>
    %248 = vector.extract_strided_slice %247 {offsets = [0, 0], sizes = [16, 8], strides = [1, 1]} : vector<16x96xf32> to vector<16x8xf32>
    %249 = arith.truncf %248 : vector<16x8xf32> to vector<16x8xbf16>
    %250 = vector.extract_strided_slice %247 {offsets = [0, 32], sizes = [16, 8], strides = [1, 1]} : vector<16x96xf32> to vector<16x8xf32>
    %251 = arith.truncf %250 : vector<16x8xf32> to vector<16x8xbf16>
    %252 = vector.extract_strided_slice %247 {offsets = [0, 64], sizes = [16, 8], strides = [1, 1]} : vector<16x96xf32> to vector<16x8xf32>
    %253 = arith.truncf %252 : vector<16x8xf32> to vector<16x8xbf16>
    %cst_125 = arith.constant dense<0.000000e+00> : vector<16x16xf32>
    %254 = tpu.matmul %249, %251, %cst_125 {dimension_numbers = #tpu.dot_dimension_numbers<[1], [1], [0], [0], [0, 0, 1, 0], [], []>} : vector<16x8xbf16>, vector<16x8xbf16>, vector<16x16xf32> -> vector<16x16xf32>
    %cst_126 = arith.constant 0.353553385 : f32
    %255 = vector.broadcast %cst_126 : f32 to vector<16x16xf32>
    %256 = arith.mulf %254, %255 : vector<16x16xf32>
    %257 = arith.addf %256, %1 : vector<16x16xf32>
    %cst_127 = arith.constant dense<0xFF800000> : vector<16xf32>
    %258 = vector.multi_reduction <maximumf>, %257, %cst_127 [1] : vector<16x16xf32> to vector<16xf32>
    %259 = vector.shape_cast %258 : vector<16xf32> to vector<16x1xf32>
    %260 = vector.broadcast %259 : vector<16x1xf32> to vector<16x16xf32>
    %261 = arith.subf %257, %260 : vector<16x16xf32>
    %262 = math.exp %261 : vector<16x16xf32>
    %cst_128 = arith.constant dense<0.000000e+00> : vector<16xf32>
    %263 = vector.multi_reduction <add>, %262, %cst_128 [1] : vector<16x16xf32> to vector<16xf32>
    %264 = vector.shape_cast %263 : vector<16xf32> to vector<16x1xf32>
    %cst_129 = arith.constant 1.000000e-30 : f32
    %265 = vector.broadcast %cst_129 : f32 to vector<16x1xf32>
    %266 = arith.maximumf %264, %265 : vector<16x1xf32>
    %267 = tpu.reciprocal %266 {approx = true} : vector<16x1xf32> -> vector<16x1xf32>
    %268 = vector.broadcast %267 : vector<16x1xf32> to vector<16x16xf32>
    %269 = arith.mulf %262, %268 : vector<16x16xf32>
    %270 = arith.truncf %269 : vector<16x16xf32> to vector<16x16xbf16>
    %cst_130 = arith.constant dense<0.000000e+00> : vector<16x8xf32>
    %271 = tpu.matmul %270, %253, %cst_130 {dimension_numbers = #tpu.dot_dimension_numbers<[1], [0], [0], [1], [0, 0, 1, 1], [], []>} : vector<16x16xbf16>, vector<16x8xbf16>, vector<16x8xf32> -> vector<16x8xf32>
    %272 = vector.extract_strided_slice %247 {offsets = [0, 8], sizes = [16, 8], strides = [1, 1]} : vector<16x96xf32> to vector<16x8xf32>
    %273 = arith.truncf %272 : vector<16x8xf32> to vector<16x8xbf16>
    %274 = vector.extract_strided_slice %247 {offsets = [0, 40], sizes = [16, 8], strides = [1, 1]} : vector<16x96xf32> to vector<16x8xf32>
    %275 = arith.truncf %274 : vector<16x8xf32> to vector<16x8xbf16>
    %276 = vector.extract_strided_slice %247 {offsets = [0, 72], sizes = [16, 8], strides = [1, 1]} : vector<16x96xf32> to vector<16x8xf32>
    %277 = arith.truncf %276 : vector<16x8xf32> to vector<16x8xbf16>
    %cst_131 = arith.constant dense<0.000000e+00> : vector<16x16xf32>
    %278 = tpu.matmul %273, %275, %cst_131 {dimension_numbers = #tpu.dot_dimension_numbers<[1], [1], [0], [0], [0, 0, 1, 0], [], []>} : vector<16x8xbf16>, vector<16x8xbf16>, vector<16x16xf32> -> vector<16x16xf32>
    %cst_132 = arith.constant 0.353553385 : f32
    %279 = vector.broadcast %cst_132 : f32 to vector<16x16xf32>
    %280 = arith.mulf %278, %279 : vector<16x16xf32>
    %281 = arith.addf %280, %1 : vector<16x16xf32>
    %cst_133 = arith.constant dense<0xFF800000> : vector<16xf32>
    %282 = vector.multi_reduction <maximumf>, %281, %cst_133 [1] : vector<16x16xf32> to vector<16xf32>
    %283 = vector.shape_cast %282 : vector<16xf32> to vector<16x1xf32>
    %284 = vector.broadcast %283 : vector<16x1xf32> to vector<16x16xf32>
    %285 = arith.subf %281, %284 : vector<16x16xf32>
    %286 = math.exp %285 : vector<16x16xf32>
    %cst_134 = arith.constant dense<0.000000e+00> : vector<16xf32>
    %287 = vector.multi_reduction <add>, %286, %cst_134 [1] : vector<16x16xf32> to vector<16xf32>
    %288 = vector.shape_cast %287 : vector<16xf32> to vector<16x1xf32>
    %cst_135 = arith.constant 1.000000e-30 : f32
    %289 = vector.broadcast %cst_135 : f32 to vector<16x1xf32>
    %290 = arith.maximumf %288, %289 : vector<16x1xf32>
    %291 = tpu.reciprocal %290 {approx = true} : vector<16x1xf32> -> vector<16x1xf32>
    %292 = vector.broadcast %291 : vector<16x1xf32> to vector<16x16xf32>
    %293 = arith.mulf %286, %292 : vector<16x16xf32>
    %294 = arith.truncf %293 : vector<16x16xf32> to vector<16x16xbf16>
    %cst_136 = arith.constant dense<0.000000e+00> : vector<16x8xf32>
    %295 = tpu.matmul %294, %277, %cst_136 {dimension_numbers = #tpu.dot_dimension_numbers<[1], [0], [0], [1], [0, 0, 1, 1], [], []>} : vector<16x16xbf16>, vector<16x8xbf16>, vector<16x8xf32> -> vector<16x8xf32>
    %296 = vector.extract_strided_slice %247 {offsets = [0, 16], sizes = [16, 8], strides = [1, 1]} : vector<16x96xf32> to vector<16x8xf32>
    %297 = arith.truncf %296 : vector<16x8xf32> to vector<16x8xbf16>
    %298 = vector.extract_strided_slice %247 {offsets = [0, 48], sizes = [16, 8], strides = [1, 1]} : vector<16x96xf32> to vector<16x8xf32>
    %299 = arith.truncf %298 : vector<16x8xf32> to vector<16x8xbf16>
    %300 = vector.extract_strided_slice %247 {offsets = [0, 80], sizes = [16, 8], strides = [1, 1]} : vector<16x96xf32> to vector<16x8xf32>
    %301 = arith.truncf %300 : vector<16x8xf32> to vector<16x8xbf16>
    %cst_137 = arith.constant dense<0.000000e+00> : vector<16x16xf32>
    %302 = tpu.matmul %297, %299, %cst_137 {dimension_numbers = #tpu.dot_dimension_numbers<[1], [1], [0], [0], [0, 0, 1, 0], [], []>} : vector<16x8xbf16>, vector<16x8xbf16>, vector<16x16xf32> -> vector<16x16xf32>
    %cst_138 = arith.constant 0.353553385 : f32
    %303 = vector.broadcast %cst_138 : f32 to vector<16x16xf32>
    %304 = arith.mulf %302, %303 : vector<16x16xf32>
    %305 = arith.addf %304, %1 : vector<16x16xf32>
    %cst_139 = arith.constant dense<0xFF800000> : vector<16xf32>
    %306 = vector.multi_reduction <maximumf>, %305, %cst_139 [1] : vector<16x16xf32> to vector<16xf32>
    %307 = vector.shape_cast %306 : vector<16xf32> to vector<16x1xf32>
    %308 = vector.broadcast %307 : vector<16x1xf32> to vector<16x16xf32>
    %309 = arith.subf %305, %308 : vector<16x16xf32>
    %310 = math.exp %309 : vector<16x16xf32>
    %cst_140 = arith.constant dense<0.000000e+00> : vector<16xf32>
    %311 = vector.multi_reduction <add>, %310, %cst_140 [1] : vector<16x16xf32> to vector<16xf32>
    %312 = vector.shape_cast %311 : vector<16xf32> to vector<16x1xf32>
    %cst_141 = arith.constant 1.000000e-30 : f32
    %313 = vector.broadcast %cst_141 : f32 to vector<16x1xf32>
    %314 = arith.maximumf %312, %313 : vector<16x1xf32>
    %315 = tpu.reciprocal %314 {approx = true} : vector<16x1xf32> -> vector<16x1xf32>
    %316 = vector.broadcast %315 : vector<16x1xf32> to vector<16x16xf32>
    %317 = arith.mulf %310, %316 : vector<16x16xf32>
    %318 = arith.truncf %317 : vector<16x16xf32> to vector<16x16xbf16>
    %cst_142 = arith.constant dense<0.000000e+00> : vector<16x8xf32>
    %319 = tpu.matmul %318, %301, %cst_142 {dimension_numbers = #tpu.dot_dimension_numbers<[1], [0], [0], [1], [0, 0, 1, 1], [], []>} : vector<16x16xbf16>, vector<16x8xbf16>, vector<16x8xf32> -> vector<16x8xf32>
    %320 = vector.extract_strided_slice %247 {offsets = [0, 24], sizes = [16, 8], strides = [1, 1]} : vector<16x96xf32> to vector<16x8xf32>
    %321 = arith.truncf %320 : vector<16x8xf32> to vector<16x8xbf16>
    %322 = vector.extract_strided_slice %247 {offsets = [0, 56], sizes = [16, 8], strides = [1, 1]} : vector<16x96xf32> to vector<16x8xf32>
    %323 = arith.truncf %322 : vector<16x8xf32> to vector<16x8xbf16>
    %324 = vector.extract_strided_slice %247 {offsets = [0, 88], sizes = [16, 8], strides = [1, 1]} : vector<16x96xf32> to vector<16x8xf32>
    %325 = arith.truncf %324 : vector<16x8xf32> to vector<16x8xbf16>
    %cst_143 = arith.constant dense<0.000000e+00> : vector<16x16xf32>
    %326 = tpu.matmul %321, %323, %cst_143 {dimension_numbers = #tpu.dot_dimension_numbers<[1], [1], [0], [0], [0, 0, 1, 0], [], []>} : vector<16x8xbf16>, vector<16x8xbf16>, vector<16x16xf32> -> vector<16x16xf32>
    %cst_144 = arith.constant 0.353553385 : f32
    %327 = vector.broadcast %cst_144 : f32 to vector<16x16xf32>
    %328 = arith.mulf %326, %327 : vector<16x16xf32>
    %329 = arith.addf %328, %1 : vector<16x16xf32>
    %cst_145 = arith.constant dense<0xFF800000> : vector<16xf32>
    %330 = vector.multi_reduction <maximumf>, %329, %cst_145 [1] : vector<16x16xf32> to vector<16xf32>
    %331 = vector.shape_cast %330 : vector<16xf32> to vector<16x1xf32>
    %332 = vector.broadcast %331 : vector<16x1xf32> to vector<16x16xf32>
    %333 = arith.subf %329, %332 : vector<16x16xf32>
    %334 = math.exp %333 : vector<16x16xf32>
    %cst_146 = arith.constant dense<0.000000e+00> : vector<16xf32>
    %335 = vector.multi_reduction <add>, %334, %cst_146 [1] : vector<16x16xf32> to vector<16xf32>
    %336 = vector.shape_cast %335 : vector<16xf32> to vector<16x1xf32>
    %cst_147 = arith.constant 1.000000e-30 : f32
    %337 = vector.broadcast %cst_147 : f32 to vector<16x1xf32>
    %338 = arith.maximumf %336, %337 : vector<16x1xf32>
    %339 = tpu.reciprocal %338 {approx = true} : vector<16x1xf32> -> vector<16x1xf32>
    %340 = vector.broadcast %339 : vector<16x1xf32> to vector<16x16xf32>
    %341 = arith.mulf %334, %340 : vector<16x16xf32>
    %342 = arith.truncf %341 : vector<16x16xf32> to vector<16x16xbf16>
    %cst_148 = arith.constant dense<0.000000e+00> : vector<16x8xf32>
    %343 = tpu.matmul %342, %325, %cst_148 {dimension_numbers = #tpu.dot_dimension_numbers<[1], [0], [0], [1], [0, 0, 1, 1], [], []>} : vector<16x16xbf16>, vector<16x8xbf16>, vector<16x8xf32> -> vector<16x8xf32>
    %344 = tpu.concatenate %271, %295, %319, %343 in 1 : vector<16x8xf32>, vector<16x8xf32>, vector<16x8xf32>, vector<16x8xf32> -> vector<16x32xf32>
    %345 = arith.truncf %344 : vector<16x32xf32> to vector<16x32xbf16>
    %cst_149 = arith.constant dense<0.000000e+00> : vector<16x32xf32>
    %346 = tpu.matmul %345, %219, %cst_149 {dimension_numbers = #tpu.dot_dimension_numbers<[1], [0], [0], [1], [0, 0, 1, 1], [], []>} : vector<16x32xbf16>, vector<32x32xbf16>, vector<16x32xf32> -> vector<16x32xf32>
    %347 = arith.addf %197, %346 : vector<16x32xf32>
    %348 = vector.broadcast %211 : vector<1x32xf32> to vector<16x32xf32>
    %349 = arith.addf %347, %348 : vector<16x32xf32>
    %cst_150 = arith.constant dense<0.000000e+00> : vector<16xf32>
    %350 = vector.multi_reduction <add>, %349, %cst_150 [1] : vector<16x32xf32> to vector<16xf32>
    %351 = vector.shape_cast %350 : vector<16xf32> to vector<16x1xf32>
    %cst_151 = arith.constant 3.200000e+01 : f32
    %352 = vector.broadcast %cst_151 : f32 to vector<16x1xf32>
    %353 = arith.divf %351, %352 : vector<16x1xf32>
    %354 = vector.broadcast %353 : vector<16x1xf32> to vector<16x32xf32>
    %355 = arith.subf %349, %354 : vector<16x32xf32>
    %356 = arith.mulf %355, %355 : vector<16x32xf32>
    %cst_152 = arith.constant dense<0.000000e+00> : vector<16xf32>
    %357 = vector.multi_reduction <add>, %356, %cst_152 [1] : vector<16x32xf32> to vector<16xf32>
    %358 = vector.shape_cast %357 : vector<16xf32> to vector<16x1xf32>
    %cst_153 = arith.constant 3.200000e+01 : f32
    %359 = vector.broadcast %cst_153 : f32 to vector<16x1xf32>
    %360 = arith.divf %358, %359 : vector<16x1xf32>
    %361 = vector.broadcast %353 : vector<16x1xf32> to vector<16x32xf32>
    %362 = arith.subf %349, %361 : vector<16x32xf32>
    %cst_154 = arith.constant 9.99999974E-6 : f32
    %363 = vector.broadcast %cst_154 : f32 to vector<16x1xf32>
    %364 = arith.addf %360, %363 : vector<16x1xf32>
    %365 = math.rsqrt %364 : vector<16x1xf32>
    %366 = vector.broadcast %365 : vector<16x1xf32> to vector<16x32xf32>
    %367 = arith.mulf %362, %366 : vector<16x32xf32>
    %368 = vector.broadcast %203 : vector<1x32xf32> to vector<16x32xf32>
    %369 = arith.mulf %367, %368 : vector<16x32xf32>
    %370 = vector.broadcast %205 : vector<1x32xf32> to vector<16x32xf32>
    %371 = arith.addf %369, %370 : vector<16x32xf32>
    %372 = arith.truncf %371 : vector<16x32xf32> to vector<16x32xbf16>
    %cst_155 = arith.constant dense<0.000000e+00> : vector<16x128xf32>
    %373 = tpu.matmul %372, %217, %cst_155 {dimension_numbers = #tpu.dot_dimension_numbers<[1], [0], [0], [1], [0, 0, 1, 1], [], []>} : vector<16x32xbf16>, vector<32x128xbf16>, vector<16x128xf32> -> vector<16x128xf32>
    %374 = vector.broadcast %209 : vector<1x128xf32> to vector<16x128xf32>
    %375 = arith.addf %373, %374 : vector<16x128xf32>
    %cst_156 = arith.constant 5.000000e-01 : f32
    %376 = vector.broadcast %cst_156 : f32 to vector<16x128xf32>
    %377 = arith.mulf %376, %375 : vector<16x128xf32>
    %cst_157 = arith.constant 4.471500e-02 : f32
    %378 = vector.broadcast %cst_157 : f32 to vector<16x128xf32>
    %379 = arith.mulf %378, %375 : vector<16x128xf32>
    %380 = arith.mulf %379, %375 : vector<16x128xf32>
    %381 = arith.mulf %380, %375 : vector<16x128xf32>
    %382 = arith.addf %375, %381 : vector<16x128xf32>
    %cst_158 = arith.constant 0.797884583 : f32
    %383 = vector.broadcast %cst_158 : f32 to vector<16x128xf32>
    %384 = arith.mulf %383, %382 : vector<16x128xf32>
    %385 = math.tanh %384 : vector<16x128xf32>
    %cst_159 = arith.constant 1.000000e+00 : f32
    %386 = vector.broadcast %cst_159 : f32 to vector<16x128xf32>
    %387 = arith.addf %386, %385 : vector<16x128xf32>
    %388 = arith.mulf %377, %387 : vector<16x128xf32>
    %389 = arith.truncf %388 : vector<16x128xf32> to vector<16x128xbf16>
    %cst_160 = arith.constant dense<0.000000e+00> : vector<16x32xf32>
    %390 = tpu.matmul %389, %221, %cst_160 {dimension_numbers = #tpu.dot_dimension_numbers<[1], [0], [0], [1], [0, 0, 1, 1], [], []>} : vector<16x128xbf16>, vector<128x32xbf16>, vector<16x32xf32> -> vector<16x32xf32>
    %391 = arith.addf %349, %390 : vector<16x32xf32>
    %392 = vector.broadcast %213 : vector<1x32xf32> to vector<16x32xf32>
    %393 = arith.addf %391, %392 : vector<16x32xf32>
    %c0_161 = arith.constant 0 : index
    %c0_162 = arith.constant 0 : index
    %394 = vector.load %arg7[%c0_161, %c0_162] : memref<2x32xf32, #tpu.memory_space<vmem>>, vector<1x32xf32>
    %c1_163 = arith.constant 1 : index
    %c0_164 = arith.constant 0 : index
    %395 = vector.load %arg7[%c1_163, %c0_164] : memref<2x32xf32, #tpu.memory_space<vmem>>, vector<1x32xf32>
    %cst_165 = arith.constant dense<0.000000e+00> : vector<16xf32>
    %396 = vector.multi_reduction <add>, %393, %cst_165 [1] : vector<16x32xf32> to vector<16xf32>
    %397 = vector.shape_cast %396 : vector<16xf32> to vector<16x1xf32>
    %cst_166 = arith.constant 3.200000e+01 : f32
    %398 = vector.broadcast %cst_166 : f32 to vector<16x1xf32>
    %399 = arith.divf %397, %398 : vector<16x1xf32>
    %400 = vector.broadcast %399 : vector<16x1xf32> to vector<16x32xf32>
    %401 = arith.subf %393, %400 : vector<16x32xf32>
    %402 = arith.mulf %401, %401 : vector<16x32xf32>
    %cst_167 = arith.constant dense<0.000000e+00> : vector<16xf32>
    %403 = vector.multi_reduction <add>, %402, %cst_167 [1] : vector<16x32xf32> to vector<16xf32>
    %404 = vector.shape_cast %403 : vector<16xf32> to vector<16x1xf32>
    %cst_168 = arith.constant 3.200000e+01 : f32
    %405 = vector.broadcast %cst_168 : f32 to vector<16x1xf32>
    %406 = arith.divf %404, %405 : vector<16x1xf32>
    %407 = vector.broadcast %399 : vector<16x1xf32> to vector<16x32xf32>
    %408 = arith.subf %393, %407 : vector<16x32xf32>
    %cst_169 = arith.constant 9.99999974E-6 : f32
    %409 = vector.broadcast %cst_169 : f32 to vector<16x1xf32>
    %410 = arith.addf %406, %409 : vector<16x1xf32>
    %411 = math.rsqrt %410 : vector<16x1xf32>
    %412 = vector.broadcast %411 : vector<16x1xf32> to vector<16x32xf32>
    %413 = arith.mulf %408, %412 : vector<16x32xf32>
    %414 = vector.broadcast %394 : vector<1x32xf32> to vector<16x32xf32>
    %415 = arith.mulf %413, %414 : vector<16x32xf32>
    %416 = vector.broadcast %395 : vector<1x32xf32> to vector<16x32xf32>
    %417 = arith.addf %415, %416 : vector<16x32xf32>
    %418 = arith.truncf %417 : vector<16x32xf32> to vector<16x32xbf16>
    %c0_170 = arith.constant 0 : index
    %c0_171 = arith.constant 0 : index
    %419 = vector.load %arg4[%c0_170, %c0_171] : memref<32x128xbf16, #tpu.memory_space<vmem>>, vector<32x128xbf16>
    %cst_172 = arith.constant dense<0.000000e+00> : vector<16x128xf32>
    %420 = tpu.matmul %418, %419, %cst_172 {dimension_numbers = #tpu.dot_dimension_numbers<[1], [0], [0], [1], [0, 0, 1, 1], [], []>} : vector<16x32xbf16>, vector<32x128xbf16>, vector<16x128xf32> -> vector<16x128xf32>
    %c0_173 = arith.constant 0 : index
    %c0_174 = arith.constant 0 : index
    %421 = vector.load %arg8[%c0_173, %c0_174] : memref<16x128xf32, #tpu.memory_space<vmem>>, vector<16x128xf32>
    tpu.vector_store %arg8[%c0_173, %c0_174], %420 {strides = array<i32>} : memref<16x128xf32, #tpu.memory_space<vmem>>, vector<16x128xf32>,
    return
  }
}

</mosaic_0001>

<bundles_post_ra>
// kernel: gpt2_forward.1
= control target key start
LH: loop header
LB: loop body
LE: loop exit
PB: predicated region body
PF: predicated region fallthrough
CT: control target
= control target key end

     0   :  { %vm73_vm0 = vcmask 261120   ;;  %s3210_s0 = inlined_call_operand.vmem [shape: f32[16,32], index: 0, kind: input, shape index: {}]   ;;  %s3211_s1 = inlined_call_operand.vmem [shape: f32[16,16], index: 1, kind: input, shape index: {}]   ;;  %s3212_s2 = inlined_call_operand.vmem [shape: bf16[2,3,32,128], index: 2, kind: input, shape index: {}]   ;;  %s3213_s3 = inlined_call_operand.vmem [shape: bf16[2,128,32], index: 3, kind: input, shape index: {}]   ;;  %s3214_s4 = inlined_call_operand.vmem [shape: bf16[32,128], index: 4, kind: input, shape index: {}]   ;;  %s3215_s5 = inlined_call_operand.vmem [shape: f32[2,4,32], index: 5, kind: input, shape index: {}]   ;;  %s3216_s6 = inlined_call_operand.vmem [shape: f32[2,4,128], index: 6, kind: input, shape index: {}]   ;;  %s3217_s7 = inlined_call_operand.vmem [shape: f32[2,32], index: 7, kind: input, shape index: {}]   ;;  %s3218_s8 = inlined_call_operand.hbm [shape: f32[16,128], index: 8, kind: output, shape index: {}]  }
   0x1   :  { %v2711_v0 = vld [vmem:[%s3210_s0] sm:$0xff]  ;;  %v2716_v1 = vld [vmem:[%s3210_s0 + $0x8] sm:$0xff] }
   0x2   :  { %v74_v2 = vsel %vm73_vm0, %v2711_v0, 0.0  ;;  %v77_v3 = vsel %vm73_vm0, %v2716_v1, 0.0 }
   0x3   :  { %75 = vadd.xlane.f32.xlu0 %v74_v2 }
   0x7   :  { %78 = vadd.xlane.f32.xlu0 %v77_v3 }
   0x8   :  { %13 = vsyncpa [#allocation3], 0  ;;  %v2499_v14 = vld [vmem:[%s3212_s2] sm:$0xff]   ;;  %v2645_v15 = vmov 0.0   ;;  %v2500_v16 = vld [vmem:[%s3212_s2 + $0x8] sm:$0xff]   ;;  %vm2646_vm1 = vmmov 0  }
   0x9   :  { %2259 = vmatprep.subr.bf16.mxu1 %v2645_v15  ;;  %2273 = vmatprep.subr.bf16.mxu0 %v2645_v15  ;;  %v2081_v25 = vld [vmem:[%s3215_s5] ss:$0 sm:$0xff]  ;;  %v2082_v29 = vld [vmem:[%s3215_s5 + $0x1] ss:$0 sm:$0xff]  ;;  %s2647_s18 = smov 88   ;;  %s2648_s19 = smov 96  }
   0xa   :  { %2260 = vmatpush3.bf16.msra.mxu1 %v2499_v14  ;;  %2263 = vmatprep.mubr.msk.bf16.mxu1 %vm2646_vm1, %v2645_v15  ;;  %v2083_v34 = vld [vmem:[%s3216_s6] ss:$0 sm:$0xff]  ;;  %s2649_s20 = smov 120   ;;  %s2650_s21 = smov 112   ;;  %vm178_vm2 = vcmask 64512   ;;  %vm230_vm3 = vcmask 130048  }
   0xb   :  { %2261 = vmatprep.subr.bf16.mxu1 %v2645_v15  ;;  %2275 = vmatprep.mubr.msk.bf16.mxu0 %vm2646_vm1, %v2645_v15  ;;  %s2651_s22 = smov 80   ;;  %s2652_s23 = smov 104   ;;  %v2792_v54 = vld [vmem:[%s3211_s1] sm:$0xff]  ;;  %v2797_v58 = vld [vmem:[%s3211_s1 + $0x8] sm:$0xff]  ;;  %vm712_vm4 = vcmask 195584  }
   0xc   :  { %s2653_s24 = smov 72   ;;  %s2654_s1 = smov 64  }
   0xd   :  { %s2655_s29 = smov 48   ;;  %s2656_s30 = smov 40  }
   0xe   :  { %2262 = vmatpush3.bf16.msra.mxu1 %v2500_v16  ;;  %s2657_s0 = smov 56   ;;  %s2658_s11 = smov 8  }
   0xf   :  { %2267 = vmatprep.subr.bf16.mxu1 %v2645_v15  ;;  %s2659_s14 = smov 16   ;;  %s2660_s15 = smov 24  }
  0x10   :  { %s2661_s16 = smov [#allocation2]  }
  0x11   :  { %s2062_s17 = sshll.u32 %s2661_s16, 4  ;;  %s2063_s17 = int_to_ptr.vmem [resolvable:$true] %s2062_s17 }
  0x12   :  { %s2621_s25 = scalar_lea.vmem %s2063_s17, 256  ;;  %p2626_p1 = scmp.lt.s32.totalorder %s2063_s17, %s2063_s17 }
  0x13   :  { %p2622_p0 = scmp.ne.s32.totalorder %s2063_s17, %s2621_s25  ;;  %p2627_p2 = scmp.lt.s32.totalorder %s2621_s25, %s2621_s25 }
  0x15   :  { %p2628_p3 = por %p2627_p2, %p2626_p1 }
  0x17   :  { %p2629_p4 = pnand %p2628_p3, %p2622_p0 }
  0x90   :  { %v76_v4 = vpop.xlane.xlu0 %75 }
  0x91   :  { %v81_v5 = vmul.f32 0.03125, %v76_v4 }
  0x93   :  { %v83_v6 = vsub.f32 %v2711_v0, %v81_v5 }
  0x94   :  { %v79_v7 = vpop.xlane.xlu0 %78 }
  0x95   :  { %v82_v8 = vmul.f32 0.03125, %v79_v7  ;;  %v85_v9 = vmul.f32 %v83_v6, %v83_v6 }
  0x97   :  { %v84_v10 = vsub.f32 %v2716_v1, %v82_v8  ;;  %v87_v11 = vsel %vm73_vm0, %v85_v9, 0.0 }
  0x98   :  { %88 = vadd.xlane.f32.xlu1 %v87_v11 }
  0x99   :  { %v86_v12 = vmul.f32 %v84_v10, %v84_v10 }
  0x9b   :  { %v90_v13 = vsel %vm73_vm0, %v86_v12, 0.0 }
  0x9c   :  { %91 = vadd.xlane.f32.xlu1 %v90_v13 }
 0x125   :  { %v89_v17 = vpop.xlane.xlu1 %88 }
 0x126   :  { %v93_v18 = vmul.f32 0.03125, %v89_v17 }
 0x128   :  { %v95_v19 = vadd.f32 1e-05, %v93_v18 }
 0x129   :  { %v92_v20 = vpop.xlane.xlu1 %91 }
 0x12a   :  { %2529 = vrsqrt.f32 %v95_v19  ;;  %v94_v21 = vmul.f32 0.03125, %v92_v20 }
 0x12c   :  { %v96_v22 = vadd.f32 1e-05, %v94_v21 }
 0x12e   :  { %2531 = vrsqrt.f32 %v96_v22 }
 0x134   :  { %v2530_v23 = vpop.eup %2529 }
 0x135   :  { %v99_v24 = vmul.f32 %v2530_v23, %v83_v6 }
 0x137   :  { %v105_v28 = vmul.f32 %v2081_v25, %v99_v24 }
 0x138   :  { %v2532_v26 = vpop.eup %2531 }
 0x139   :  { %v100_v27 = vmul.f32 %v2532_v26, %v84_v10  ;;  %v111_v31 = vadd.f32 %v2082_v29, %v105_v28 }
 0x13b   :  { %v106_v30 = vmul.f32 %v2081_v25, %v100_v27 }
 0x13d   :  { %v112_v32 = vadd.f32 %v2082_v29, %v106_v30 }
 0x13f   :  { %v113_v33 = vpack.c.bf16 %v112_v32, %v111_v31 }
 0x141   :  { %2264 = vmatmul.mubr.msk.bf16.vlgmr.msra.gmra.mrb[0].mxu1 %vm73_vm0, %v113_v33 }
 0x142   :  { %2269 = vmatprep.mubr.msk.bf16.mxu1 %vm2646_vm1, %v2645_v15 }
 0x214   :  { %v167_v35 = vpop.f32.mrb[0].mxu1 }
 0x215   :  { %v2265_v36 = vpop.f32.mrb[1].mxu1  ;;  %v168_v38 = vadd.f32 %v2083_v34, %v167_v35 }
 0x216   :  { %v170_v37 = vpop.f32.mrb[2].mxu1 }
 0x217   :  { %v171_v39 = vadd.f32 %v2083_v34, %v170_v37  ;;  %v2266_v40 = vpop.f32.mrb[3].mxu1 }
 0x219   :  { %v2752_v41 = vpack.c.bf16 %v171_v39, %v168_v38 }
 0x21b   :  { %305 = vrot.lane.b32.xlu1 %v2752_v41, %s2647_s18  ;;  %176 = vrot.lane.b32.xlu0 %v2752_v41, %s2648_s19 }
 0x21f   :  { %303 = vrot.lane.b32.xlu1 %v2752_v41, %s2649_s20  ;;  %430 = vrot.lane.b32.xlu0 %v2752_v41, %s2650_s21 }
 0x223   :  { %432 = vrot.lane.b32.xlu1 %v2752_v41, %s2651_s22  ;;  %557 = vrot.lane.b32.xlu0 %v2752_v41, %s2652_s23 }
 0x227   :  { %559 = vrot.lane.b32.xlu1 %v2752_v41, %s2653_s24 }
 0x28d   :  { %v177_v42 = vpop.permute.xlu0 %176  ;;  %v306_v44 = vpop.permute.xlu1 %305 }
 0x28e   :  { %v183_v43 = vsel %vm178_vm2, %v177_v42, 0  ;;  %v311_v46 = vsel %vm178_vm2, %v306_v44, 0 }
 0x28f   :  { %2268 = vmatpush3.bf16.xpose.msra.mxu1 %v183_v43 }
 0x290   :  { %2279 = vmatprep.subr.bf16.mxu1 %v2645_v15 }
 0x291   :  { %v304_v45 = vpop.permute.xlu1 %303  ;;  %v431_v50 = vpop.permute.xlu0 %430 }
 0x295   :  { %v433_v47 = vpop.permute.xlu1 %432  ;;  %v558_v52 = vpop.permute.xlu0 %557 }
 0x296   :  { %2270 = vmatmul.mubr.msk.bf16.vlgmr.msra.gmra.mrb[4].mxu1 %vm178_vm2, %v2752_v41  ;;  %v438_v48 = vsel %vm178_vm2, %v433_v47, 0 }
 0x297   :  { %2280 = vmatpush3.bf16.xpose.msra.mxu1 %v311_v46  ;;  %2281 = vmatprep.mubr.msk.bf16.mxu1 %vm2646_vm1, %v2645_v15 }
 0x298   :  { %2291 = vmatprep.subr.bf16.mxu1 %v2645_v15 }
 0x299   :  { %v560_v49 = vpop.permute.xlu1 %559 }
 0x29a   :  { %v565_v51 = vsel %vm178_vm2, %v560_v49, 0 }
 0x29e   :  { %2282 = vmatmul.mubr.msk.bf16.vlgmr.msra.gmra.mrb[8].mxu1 %vm178_vm2, %v304_v45 }
 0x29f   :  { %2292 = vmatpush3.bf16.xpose.msra.mxu1 %v438_v48  ;;  %2293 = vmatprep.mubr.msk.bf16.mxu1 %vm2646_vm1, %v2645_v15 }
 0x2a0   :  { %2303 = vmatprep.subr.bf16.mxu1 %v2645_v15 }
 0x2a6   :  { %2294 = vmatmul.mubr.msk.bf16.vlgmr.msra.gmra.mrb[12].mxu1 %vm178_vm2, %v431_v50 }
 0x2a7   :  { %2304 = vmatpush3.bf16.xpose.msra.mxu1 %v565_v51  ;;  %2305 = vmatprep.mubr.msk.bf16.mxu1 %vm2646_vm1, %v2645_v15 }
 0x2a8   :  { %2315 = vmatprep.subr.bf16.mxu1 %v2645_v15 }
 0x2ae   :  { %2306 = vmatmul.mubr.msk.bf16.vlgmr.msra.gmra.mrb[16].mxu1 %vm178_vm2, %v558_v52 }
 0x2af   :  { %2319 = vmatprep.mubr.msk.bf16.mxu1 %vm2646_vm1, %v2645_v15 }
 0x369   :  { %v219_v53 = vpop.f32.mrb[4].mxu1 }
 0x36a   :  { %v226_v55 = vmul.f32 0.35355338, %v219_v53  ;;  %v2271_v56 = vpop.f32.mrb[5].mxu1 }
 0x36b   :  { %v222_v57 = vpop.f32.mrb[6].mxu1 }
 0x36c   :  { %v227_v59 = vmul.f32 0.35355338, %v222_v57  ;;  %v2272_v60 = vpop.f32.mrb[7].mxu1  ;;  %v228_v61 = vadd.f32 %v226_v55, %v2792_v54 }
 0x36e   :  { %v231_v62 = vsel %vm230_vm3, %v228_v61, -inf  ;;  %v229_v63 = vadd.f32 %v227_v59, %v2797_v58 }
 0x36f   :  { %232 = vmax.xlane.f32.xlu1 %v231_v62 }
 0x370   :  { %v234_v2 = vsel %vm230_vm3, %v229_v63, -inf }
 0x371   :  { %235 = vmax.xlane.f32.xlu0 %v234_v2  ;;  %v347_v3 = vpop.f32.mrb[8].mxu1 }
 0x372   :  { %v354_v4 = vmul.f32 0.35355338, %v347_v3  ;;  %v2283_v5 = vpop.f32.mrb[9].mxu1 }
 0x373   :  { %v350_v6 = vpop.f32.mrb[10].mxu1 }
 0x374   :  { %v355_v7 = vmul.f32 0.35355338, %v350_v6  ;;  %v2284_v8 = vpop.f32.mrb[11].mxu1  ;;  %v356_v9 = vadd.f32 %v354_v4, %v2792_v54 }
 0x376   :  { %v358_v10 = vsel %vm230_vm3, %v356_v9, -inf  ;;  %v357_v11 = vadd.f32 %v355_v7, %v2797_v58 }
 0x377   :  { %359 = vmax.xlane.f32.xlu0 %v358_v10 }
 0x378   :  { %v361_v16 = vsel %vm230_vm3, %v357_v11, -inf }
 0x379   :  { %v474_v12 = vpop.f32.mrb[12].mxu1 }
 0x37a   :  { %v481_v13 = vmul.f32 0.35355338, %v474_v12  ;;  %v2295_v14 = vpop.f32.mrb[13].mxu1 }
 0x37b   :  { %362 = vmax.xlane.f32.xlu0 %v361_v16  ;;  %v477_v17 = vpop.f32.mrb[14].mxu1 }
 0x37c   :  { %v482_v18 = vmul.f32 0.35355338, %v477_v17  ;;  %v2296_v19 = vpop.f32.mrb[15].mxu1  ;;  %v483_v20 = vadd.f32 %v481_v13, %v2792_v54 }
 0x37e   :  { %v485_v21 = vsel %vm230_vm3, %v483_v20, -inf  ;;  %v484_v22 = vadd.f32 %v482_v18, %v2797_v58 }
 0x37f   :  { %486 = vmax.xlane.f32.xlu1 %v485_v21 }
 0x380   :  { %v488_v23 = vsel %vm230_vm3, %v484_v22, -inf }
 0x381   :  { %489 = vmax.xlane.f32.xlu0 %v488_v23  ;;  %v601_v24 = vpop.f32.mrb[16].mxu1 }
 0x382   :  { %v608_v25 = vmul.f32 0.35355338, %v601_v24  ;;  %v2307_v26 = vpop.f32.mrb[17].mxu1 }
 0x383   :  { %v604_v27 = vpop.f32.mrb[18].mxu1 }
 0x384   :  { %v609_v28 = vmul.f32 0.35355338, %v604_v27  ;;  %v2308_v29 = vpop.f32.mrb[19].mxu1  ;;  %v610_v30 = vadd.f32 %v608_v25, %v2792_v54 }
 0x386   :  { %v612_v31 = vsel %vm230_vm3, %v610_v30, -inf  ;;  %v611_v32 = vadd.f32 %v609_v28, %v2797_v58 }
 0x387   :  { %613 = vmax.xlane.f32.xlu1 %v612_v31 }
 0x388   :  { %v615_v33 = vsel %vm230_vm3, %v611_v32, -inf }
 0x389   :  { %616 = vmax.xlane.f32.xlu0 %v615_v33 }
 0x398   :  { %256 = vrot.lane.b32.xlu1 %v2752_v41, %s2654_s1 }
 0x3fc   :  { %v233_v34 = vpop.xlane.xlu1 %232 }
 0x3fd   :  { %v237_v35 = vsub.f32 %v228_v61, %v233_v34 }
 0x3fe   :  { %v236_v36 = vpop.xlane.xlu0 %235 }
 0x3ff   :  { %v239_v37 = vmul.f32 1.442695, %v237_v35  ;;  %v238_v38 = vsub.f32 %v229_v63, %v236_v36 }
 0x401   :  { %2533 = vpow2.f32 %v239_v37  ;;  %v241_v39 = vmul.f32 1.442695, %v238_v38 }
 0x403   :  { %2535 = vpow2.f32 %v241_v39 }
 0x404   :  { %v360_v40 = vpop.xlane.xlu0 %359 }
 0x405   :  { %v364_v42 = vsub.f32 %v356_v9, %v360_v40 }
 0x407   :  { %v366_v43 = vmul.f32 1.442695, %v364_v42 }
 0x408   :  { %v363_v44 = vpop.xlane.xlu0 %362 }
 0x409   :  { %2537 = vpow2.f32 %v366_v43  ;;  %v365_v45 = vsub.f32 %v357_v11, %v363_v44 }
 0x40b   :  { %v2817_v46 = vpop.eup %2533  ;;  %v368_v47 = vmul.f32 1.442695, %v365_v45 }
 0x40c   :  { %v487_v48 = vpop.xlane.xlu1 %486  ;;  %v243_v49 = vsel %vm230_vm3, %v2817_v46, 0.0 }
 0x40d   :  { %v2536_v50 = vpop.eup %2535  ;;  %2539 = vpow2.f32 %v368_v47  ;;  %v491_v51 = vsub.f32 %v483_v20, %v487_v48  ;;  %244 = vadd.xlane.f32.xlu1 %v243_v49 }
 0x40e   :  { %v490_v52 = vpop.xlane.xlu0 %489  ;;  %v246_v53 = vsel %vm230_vm3, %v2536_v50, 0.0 }
 0x40f   :  { %v493_v55 = vmul.f32 1.442695, %v491_v51  ;;  %v492_v56 = vsub.f32 %v484_v22, %v490_v52  ;;  %247 = vadd.xlane.f32.xlu0 %v246_v53 }
 0x411   :  { %2541 = vpow2.f32 %v493_v55  ;;  %v495_v57 = vmul.f32 1.442695, %v492_v56 }
 0x413   :  { %v2822_v59 = vpop.eup %2537  ;;  %2543 = vpow2.f32 %v495_v57 }
 0x414   :  { %v614_v60 = vpop.xlane.xlu1 %613  ;;  %v370_v61 = vsel %vm230_vm3, %v2822_v59, 0.0 }
 0x415   :  { %v618_v62 = vsub.f32 %v610_v30, %v614_v60  ;;  %371 = vadd.xlane.f32.xlu1 %v370_v61 }
 0x416   :  { %v617_v63 = vpop.xlane.xlu0 %616 }
 0x417   :  { %v2540_v2 = vpop.eup %2539  ;;  %v620_v3 = vmul.f32 1.442695, %v618_v62  ;;  %v619_v4 = vsub.f32 %v611_v32, %v617_v63 }
 0x418   :  { %v257_v5 = vpop.permute.xlu1 %256  ;;  %v373_v6 = vsel %vm230_vm3, %v2540_v2, 0.0 }
 0x419   :  { %2545 = vpow2.f32 %v620_v3  ;;  %v622_v7 = vmul.f32 1.442695, %v619_v4  ;;  %2274 = vmatpush3.bf16.msra.mxu0 %v257_v5  ;;  %374 = vadd.xlane.f32.xlu0 %v373_v6  ;;  %v2501_v3 = vld [vmem:[%s3212_s2 + $0x20] sm:$0xff]  }
 0x41a   :  { %2285 = vmatprep.subr.bf16.mxu0 %v2645_v15  ;;  %2316 = vmatpush3.bf16.msra.mxu1 %v2501_v3  ;;  %v2099_v3 = vld [vmem:[%s3215_s5 + $0x2] ss:$0 sm:$0xff] }
 0x41b   :  { %v2828_v8 = vpop.eup %2541  ;;  %2547 = vpow2.f32 %v622_v7  ;;  %2317 = vmatprep.subr.bf16.mxu1 %v2645_v15 }
 0x41c   :  { %v497_v9 = vsel %vm230_vm3, %v2828_v8, 0.0 }
 0x41d   :  { %v2544_v10 = vpop.eup %2543  ;;  %498 = vadd.xlane.f32.xlu1 %v497_v9 }
 0x41e   :  { %v500_v11 = vsel %vm230_vm3, %v2544_v10, 0.0 }
 0x41f   :  { %501 = vadd.xlane.f32.xlu0 %v500_v11 }
 0x423   :  { %v2833_v12 = vpop.eup %2545 }
 0x424   :  { %v624_v13 = vsel %vm230_vm3, %v2833_v12, 0.0 }
 0x425   :  { %v2837_v14 = vpop.eup %2547  ;;  %625 = vadd.xlane.f32.xlu1 %v624_v13 }
 0x426   :  { %v627_v16 = vsel %vm230_vm3, %v2837_v14, 0.0 }
 0x427   :  { %628 = vadd.xlane.f32.xlu0 %v627_v16 }
 0x436   :  { %510 = vrot.lane.b32.xlu1 %v2752_v41, %s2655_s29 }
 0x43a   :  { %637 = vrot.lane.b32.xlu1 %v2752_v41, %s2656_s30 }
 0x43d   :  { %383 = vrot.lane.b32.xlu0 %v2752_v41, %s2657_s0 }
 0x49a   :  { %v245_v17 = vpop.xlane.xlu1 %244 }
 0x49b   :  { %v249_v18 = vmax.f32 %v245_v17, 1e-30 }
 0x49c   :  { %v248_v19 = vpop.xlane.xlu0 %247 }
 0x49d   :  { %2549 = vrcp.f32 %v249_v18  ;;  %v250_v20 = vmax.f32 %v248_v19, 1e-30 }
 0x49f   :  { %2551 = vrcp.f32 %v250_v20 }
 0x4a2   :  { %v372_v21 = vpop.xlane.xlu1 %371 }
 0x4a3   :  { %v376_v24 = vmax.f32 %v372_v21, 1e-30 }
 0x4a6   :  { %v375_v22 = vpop.xlane.xlu0 %374 }
 0x4a7   :  { %v2550_v23 = vpop.eup %2549  ;;  %v377_v25 = vmax.f32 %v375_v22, 1e-30 }
 0x4a8   :  { %v253_v27 = vmul.f32 %v2550_v23, %v2817_v46 }
 0x4a9   :  { %v2552_v26 = vpop.eup %2551  ;;  %2553 = vrcp.f32 %v377_v25 }
 0x4aa   :  { %v254_v28 = vmul.f32 %v2552_v26, %v2536_v50  ;;  %2555 = vrcp.f32 %v376_v24  ;;  %v499_v29 = vpop.xlane.xlu1 %498 }
 0x4ab   :  { %v503_v32 = vmax.f32 %v499_v29, 1e-30 }
 0x4ac   :  { %v502_v30 = vpop.xlane.xlu0 %501  ;;  %v255_v41 = vpack.c.bf16 %v254_v28, %v253_v27 }
 0x4ad   :  { %v504_v31 = vmax.f32 %v502_v30, 1e-30 }
 0x4ae   :  { %2276 = vmatmul.mubr.msk.bf16.vlgmr.msra.gmra.mrb[0].mxu0 %vm230_vm3, %v255_v41 }
 0x4af   :  { %2287 = vmatprep.mubr.msk.bf16.mxu0 %vm2646_vm1, %v2645_v15  ;;  %2557 = vrcp.f32 %v504_v31 }
 0x4b0   :  { %2559 = vrcp.f32 %v503_v32 }
 0x4b2   :  { %v626_v34 = vpop.xlane.xlu1 %625 }
 0x4b3   :  { %v2554_v33 = vpop.eup %2553  ;;  %v630_v39 = vmax.f32 %v626_v34, 1e-30 }
 0x4b4   :  { %v629_v35 = vpop.xlane.xlu0 %628  ;;  %v2556_v36 = vpop.eup %2555  ;;  %v381_v38 = vmul.f32 %v2554_v33, %v2540_v2  ;;  %v2098_v33 = vld [vmem:[%s3216_s6 + $0x2] ss:$0 sm:$0xff] }
 0x4b5   :  { %v631_v37 = vmax.f32 %v629_v35, 1e-30  ;;  %v380_v40 = vmul.f32 %v2556_v36, %v2822_v59 }
 0x4b6   :  { %v511_v45 = vpop.permute.xlu1 %510 }
 0x4b7   :  { %2561 = vrcp.f32 %v631_v37  ;;  %v382_v43 = vpack.c.bf16 %v381_v38, %v380_v40 }
 0x4b8   :  { %v384_v42 = vpop.permute.xlu0 %383  ;;  %2563 = vrcp.f32 %v630_v39 }
 0x4b9   :  { %2286 = vmatpush3.bf16.msra.mxu0 %v384_v42  ;;  %v2558_v44 = vpop.eup %2557 }
 0x4ba   :  { %2297 = vmatprep.subr.bf16.mxu0 %v2645_v15  ;;  %v2560_v46 = vpop.eup %2559  ;;  %v508_v47 = vmul.f32 %v2558_v44, %v2544_v10  ;;  %v638_v51 = vpop.permute.xlu1 %637 }
 0x4bb   :  { %v507_v48 = vmul.f32 %v2560_v46, %v2828_v8  ;;  %v2502_v8 = vld [vmem:[%s3212_s2 + $0x28] sm:$0xff]  }
 0x4bc   :  { %2288 = vmatmul.mubr.msk.bf16.vlgmr.msra.gmra.mrb[4].mxu0 %vm230_vm3, %v382_v43  ;;  %2318 = vmatpush3.bf16.msra.mxu1 %v2502_v8 }
 0x4bd   :  { %2298 = vmatpush3.bf16.msra.mxu0 %v511_v45  ;;  %2299 = vmatprep.mubr.msk.bf16.mxu0 %vm2646_vm1, %v2645_v15  ;;  %v509_v49 = vpack.c.bf16 %v508_v47, %v507_v48 }
 0x4be   :  { %2309 = vmatprep.subr.bf16.mxu0 %v2645_v15  ;;  %2331 = vmatprep.subr.bf16.mxu1 %v2645_v15 }
 0x4c1   :  { %v2562_v50 = vpop.eup %2561 }
 0x4c2   :  { %v2564_v52 = vpop.eup %2563  ;;  %v635_v53 = vmul.f32 %v2562_v50, %v2837_v14 }
 0x4c3   :  { %v634_v55 = vmul.f32 %v2564_v52, %v2833_v12 }
 0x4c4   :  { %2300 = vmatmul.mubr.msk.bf16.vlgmr.msra.gmra.mrb[8].mxu0 %vm230_vm3, %v509_v49 }
 0x4c5   :  { %2310 = vmatpush3.bf16.msra.mxu0 %v638_v51  ;;  %2311 = vmatprep.mubr.msk.bf16.mxu0 %vm2646_vm1, %v2645_v15  ;;  %v636_v56 = vpack.c.bf16 %v635_v53, %v634_v55  ;;  %v2503_v53 = vld [vmem:[%s3212_s2 + $0x10] sm:$0xff]   ;;  %v2504_v55 = vld [vmem:[%s3212_s2 + $0x18] sm:$0xff]  }
 0x4c6   :  { %2323 = vmatprep.subr.bf16.mxu0 %v2645_v15 }
 0x4cc   :  { %2312 = vmatmul.mubr.msk.bf16.vlgmr.msra.gmra.mrb[12].mxu0 %vm230_vm3, %v636_v56 }
 0x4cd   :  { %2327 = vmatprep.mubr.msk.bf16.mxu0 %vm2646_vm1, %v2645_v15  ;;  %2324 = vmatpush3.bf16.msra.mxu0 %v2503_v53 }
 0x4ce   :  { %2325 = vmatprep.subr.bf16.mxu0 %v2645_v15 }
 0x4d1   :  { %2326 = vmatpush3.bf16.msra.mxu0 %v2504_v55 }
 0x4d2   :  { %2351 = vmatprep.subr.bf16.mxu0 %v2645_v15 }
 0x581   :  { %v296_v57 = vpop.f32.mrb[0].mxu0 }
 0x582   :  { %v2277_v59 = vpop.f32.mrb[1].mxu0 }
 0x583   :  { %v299_v60 = vpop.f32.mrb[2].mxu0 }
 0x584   :  { %v2278_v61 = vpop.f32.mrb[3].mxu0 }
 0x58f   :  { %v423_v62 = vpop.f32.mrb[4].mxu0 }
 0x590   :  { %v2289_v63 = vpop.f32.mrb[5].mxu0 }
 0x591   :  { %v426_v2 = vpop.f32.mrb[6].mxu0 }
 0x592   :  { %v2469_v4 = vpack.i.bf16 %v426_v2, %v423_v62  ;;  %v2290_v5 = vpop.f32.mrb[7].mxu0 }
 0x594   :  { %2470 = vrot.lane.b32.xlu1 %v2469_v4, %s2658_s11 }
 0x597   :  { %v550_v6 = vpop.f32.mrb[8].mxu0 }
 0x598   :  { %v2301_v7 = vpop.f32.mrb[9].mxu0 }
 0x599   :  { %v553_v9 = vpop.f32.mrb[10].mxu0  ;;  %v2100_v7 = vld [vmem:[%s3215_s5 + $0x3] ss:$0 sm:$0xff] }
 0x59a   :  { %v2474_v10 = vpack.i.bf16 %v553_v9, %v550_v6  ;;  %v2302_v11 = vpop.f32.mrb[11].mxu0 }
 0x59c   :  { %2475 = vrot.lane.b32.xlu0 %v2474_v10, %s2659_s14 }
 0x59f   :  { %v677_v12 = vpop.f32.mrb[12].mxu0 }
 0x5a0   :  { %v2313_v13 = vpop.f32.mrb[13].mxu0 }
 0x5a1   :  { %v680_v14 = vpop.f32.mrb[14].mxu0  ;;  %v2506_v13 = vld [vmem:[%s3213_s3 + $0x8] sm:$0xff]  }
 0x5a2   :  { %v2479_v16 = vpack.i.bf16 %v680_v14, %v677_v12  ;;  %v2314_v17 = vpop.f32.mrb[15].mxu0  ;;  %v2505_v12 = vld [vmem:[%s3213_s3] sm:$0xff]   ;;  %v2507_v14 = vld [vmem:[%s3213_s3 + $0x10] sm:$0xff]  }
 0x5a3   :  { %v2509_v17 = vld [vmem:[%s3213_s3 + $0x20] sm:$0xff]  }
 0x5a4   :  { %2480 = vrot.lane.b32.xlu1 %v2479_v16, %s2660_s15  ;;  %v2508_v16 = vld [vmem:[%s3213_s3 + $0x18] sm:$0xff]  }
 0x606   :  { %v2471_v18 = vpop.permute.xlu1 %2470 }
 0x607   :  { %v2473_v20 = vunpack.i.h.bf16 %v2471_v18  ;;  %v2472_v21 = vunpack.i.l.bf16 %v2471_v18  ;;  %v2510_v18 = vld [vmem:[%s3213_s3 + $0x28] sm:$0xff]  }
 0x609   :  { %v709_v25 = vsel %vm178_vm2, %v299_v60, %v2473_v20  ;;  %v708_v26 = vsel %vm178_vm2, %v296_v57, %v2472_v21  ;;  %v2512_v20 = vld [vmem:[%s3213_s3 + $0x38] sm:$0xff]   ;;  %v2101_v21 = vld [vmem:[%s3216_s6 + $0x1] ss:$0 sm:$0xff] }
 0x60e   :  { %v2476_v19 = vpop.permute.xlu0 %2475 }
 0x60f   :  { %v2478_v22 = vunpack.i.h.bf16 %v2476_v19  ;;  %v2477_v23 = vunpack.i.l.bf16 %v2476_v19  ;;  %v2511_v19 = vld [vmem:[%s3213_s3 + $0x30] sm:$0xff]  }
 0x611   :  { %v711_v29 = vsel %vm230_vm3, %v709_v25, %v2478_v22  ;;  %v710_v30 = vsel %vm230_vm3, %v708_v26, %v2477_v23 }
 0x616   :  { %v2481_v24 = vpop.permute.xlu1 %2480 }
 0x617   :  { %v2483_v27 = vunpack.i.h.bf16 %v2481_v24  ;;  %v2482_v28 = vunpack.i.l.bf16 %v2481_v24 }
 0x619   :  { %v714_v41 = vsel %vm712_vm4, %v711_v29, %v2483_v27  ;;  %v713_v31 = vsel %vm712_vm4, %v710_v30, %v2482_v28 }
 0x61a   :  { %v715_v32 = vpack.c.bf16 %v714_v41, %v713_v31 }
 0x61c   :  { %2320 = vmatmul.mubr.msk.bf16.vlgmr.msra.gmra.mrb[20].mxu1 %vm73_vm0, %v715_v32 }
 0x61d   :  { %2347 = vmatprep.mubr.msk.bf16.mxu1 %vm2646_vm1, %v2645_v15  ;;  %2332 = vmatpush3.bf16.msra.mxu1 %v2505_v12 }
 0x61e   :  { %2333 = vmatprep.subr.bf16.mxu1 %v2645_v15 }
 0x621   :  { %2334 = vmatpush3.bf16.msra.mxu1 %v2506_v13 }
 0x622   :  { %2335 = vmatprep.subr.bf16.mxu1 %v2645_v15 }
 0x625   :  { %2336 = vmatpush3.bf16.msra.mxu1 %v2507_v14 }
 0x626   :  { %2337 = vmatprep.subr.bf16.mxu1 %v2645_v15 }
 0x629   :  { %2338 = vmatpush3.bf16.msra.mxu1 %v2508_v16  ;;  %v2150_v16 = vld [vmem:[%s3215_s5 + $0x4] ss:$0 sm:$0xff] }
 0x62a   :  { %2339 = vmatprep.subr.bf16.mxu1 %v2645_v15 }
 0x62d   :  { %2340 = vmatpush3.bf16.msra.mxu1 %v2509_v17 }
 0x62e   :  { %2341 = vmatprep.subr.bf16.mxu1 %v2645_v15 }
 0x631   :  { %2342 = vmatpush3.bf16.msra.mxu1 %v2510_v18 }
 0x632   :  { %2343 = vmatprep.subr.bf16.mxu1 %v2645_v15 }
 0x635   :  { %2344 = vmatpush3.bf16.msra.mxu1 %v2511_v19 }
 0x636   :  { %2345 = vmatprep.subr.bf16.mxu1 %v2645_v15 }
 0x639   :  { %2346 = vmatpush3.bf16.msra.mxu1 %v2512_v20 }
 0x63a   :  { %2377 = vmatprep.subr.bf16.mxu1 %v2645_v15 }
 0x6ef   :  { %v765_v34 = vpop.f32.mrb[20].mxu1 }
 0x6f0   :  { %v772_v35 = vadd.f32 %v765_v34, %v2711_v0  ;;  %v2321_v36 = vpop.f32.mrb[21].mxu1 }
 0x6f1   :  { %v768_v37 = vpop.f32.mrb[22].mxu1 }
 0x6f2   :  { %v2891_v38 = vadd.f32 %v2098_v33, %v772_v35  ;;  %v773_v39 = vadd.f32 %v768_v37, %v2716_v1  ;;  %v2322_v40 = vpop.f32.mrb[23].mxu1 }
 0x6f4   :  { %v2894_v42 = vadd.f32 %v2098_v33, %v773_v39  ;;  %v780_v43 = vsel %vm73_vm0, %v2891_v38, 0.0 }
 0x6f5   :  { %781 = vadd.xlane.f32.xlu0 %v780_v43 }
 0x6f6   :  { %v783_v44 = vsel %vm73_vm0, %v2894_v42, 0.0 }
 0x6f7   :  { %784 = vadd.xlane.f32.xlu1 %v783_v44 }
 0x782   :  { %v782_v45 = vpop.xlane.xlu0 %781 }
 0x783   :  { %v786_v46 = vmul.f32 0.03125, %v782_v45 }
 0x784   :  { %v785_v0 = vpop.xlane.xlu1 %784 }
 0x785   :  { %v788_v47 = vsub.f32 %v2891_v38, %v786_v46  ;;  %v787_v48 = vmul.f32 0.03125, %v785_v0 }
 0x787   :  { %v789_v49 = vsub.f32 %v2894_v42, %v787_v48  ;;  %v790_v1 = vmul.f32 %v788_v47, %v788_v47  ;;  %v2113_v48 = vld [vmem:[%s3216_s6 + $0x3] ss:$0 sm:$0xff] }
 0x789   :  { %v792_v50 = vsel %vm73_vm0, %v790_v1, 0.0  ;;  %v791_v51 = vmul.f32 %v789_v49, %v789_v49 }
 0x78a   :  { %793 = vadd.xlane.f32.xlu0 %v792_v50 }
 0x78b   :  { %v795_v52 = vsel %vm73_vm0, %v791_v51, 0.0 }
 0x78e   :  { %796 = vadd.xlane.f32.xlu0 %v795_v52 }
 0x817   :  { %v794_v56 = vpop.xlane.xlu0 %793 }
 0x818   :  { %v798_v57 = vmul.f32 0.03125, %v794_v56 }
 0x81a   :  { %v800_v59 = vadd.f32 1e-05, %v798_v57 }
 0x81b   :  { %v797_v60 = vpop.xlane.xlu0 %796 }
 0x81c   :  { %2565 = vrsqrt.f32 %v800_v59  ;;  %v799_v61 = vmul.f32 0.03125, %v797_v60 }
 0x81e   :  { %v801_v62 = vadd.f32 1e-05, %v799_v61 }
 0x820   :  { %2567 = vrsqrt.f32 %v801_v62 }
 0x826   :  { %v2566_v63 = vpop.eup %2565 }
 0x827   :  { %v804_v2 = vmul.f32 %v2566_v63, %v788_v47 }
 0x829   :  { %v810_v5 = vmul.f32 %v2099_v3, %v804_v2 }
 0x82a   :  { %v2568_v4 = vpop.eup %2567 }
 0x82b   :  { %v805_v6 = vmul.f32 %v2568_v4, %v789_v49  ;;  %v816_v9 = vadd.f32 %v2100_v7, %v810_v5 }
 0x82d   :  { %v811_v8 = vmul.f32 %v2099_v3, %v805_v6  ;;  %v2513_v6 = vld [vmem:[%s3212_s2 + $0x30] sm:$0xff]  }
 0x82f   :  { %v817_v10 = vadd.f32 %v2100_v7, %v811_v8  ;;  %v2514_v7 = vld [vmem:[%s3212_s2 + $0x38] sm:$0xff]  }
 0x831   :  { %v818_v11 = vpack.c.bf16 %v817_v10, %v816_v9 }
 0x833   :  { %2328 = vmatmul.mubr.msk.bf16.vlgmr.msra.gmra.mrb[16].mxu0 %vm73_vm0, %v818_v11 }
 0x834   :  { %2355 = vmatprep.mubr.msk.bf16.mxu0 %vm2646_vm1, %v2645_v15  ;;  %2352 = vmatpush3.bf16.msra.mxu0 %v2513_v6 }
 0x835   :  { %2353 = vmatprep.subr.bf16.mxu0 %v2645_v15 }
 0x838   :  { %2354 = vmatpush3.bf16.msra.mxu0 %v2514_v7 }
 0x839   :  { %2359 = vmatprep.subr.bf16.mxu0 %v2645_v15 }
 0x906   :  { %v872_v22 = vpop.f32.mrb[16].mxu0 }
 0x907   :  { %v873_v23 = vadd.f32 %v2101_v21, %v872_v22  ;;  %v2329_v24 = vpop.f32.mrb[17].mxu0 }
 0x908   :  { %v875_v25 = vpop.f32.mrb[18].mxu0 }
 0x909   :  { %v881_v26 = vmul.f32 0.044715, %v873_v23  ;;  %v876_v27 = vadd.f32 %v2101_v21, %v875_v25  ;;  %v2330_v28 = vpop.f32.mrb[19].mxu0  ;;  %v879_v43 = vmul.f32 0.5, %v873_v23  ;;  %v2151_v21 = vld [vmem:[%s3215_s5 + $0x5] ss:$0 sm:$0xff] }
 0x90b   :  { %v883_v29 = vmul.f32 %v881_v26, %v873_v23  ;;  %v882_v30 = vmul.f32 0.044715, %v876_v27  ;;  %v880_v44 = vmul.f32 0.5, %v876_v27  ;;  %v2152_v26 = vld [vmem:[%s3216_s6 + $0x4] ss:$0 sm:$0xff] }
 0x90d   :  { %v885_v41 = vmul.f32 %v883_v29, %v873_v23  ;;  %v884_v31 = vmul.f32 %v882_v30, %v876_v27 }
 0x90f   :  { %v887_v32 = vadd.f32 %v885_v41, %v873_v23  ;;  %v886_v33 = vmul.f32 %v884_v31, %v876_v27 }
 0x911   :  { %v889_v34 = vmul.f32 0.7978846, %v887_v32  ;;  %v888_v35 = vadd.f32 %v886_v33, %v876_v27 }
 0x913   :  { %2569 = vtanh.f32 %v889_v34  ;;  %v890_v36 = vmul.f32 0.7978846, %v888_v35 }
 0x915   :  { %2571 = vtanh.f32 %v890_v36 }
 0x91d   :  { %v2570_v37 = vpop.eup %2569 }
 0x91e   :  { %v893_v39 = vadd.f32 1.0, %v2570_v37 }
 0x91f   :  { %v2572_v40 = vpop.eup %2571 }
 0x920   :  { %v894_v45 = vadd.f32 1.0, %v2572_v40  ;;  %v895_v46 = vmul.f32 %v893_v39, %v879_v43 }
 0x922   :  { %v896_v0 = vmul.f32 %v894_v45, %v880_v44 }
 0x924   :  { %v897_v47 = vpack.c.bf16 %v896_v0, %v895_v46 }
 0x926   :  { %2348 = vmatmul.mubr.bf16.vlgmr.msra.gmra.mrb[24].mxu1 %v897_v47 }
 0x927   :  { %2379 = vmatprep.mubr.msk.bf16.mxu1 %vm2646_vm1, %v2645_v15 }
 0x9f9   :  { %v980_v49 = vpop.f32.mrb[24].mxu1 }
 0x9fa   :  { %v987_v1 = vadd.f32 %v980_v49, %v2891_v38  ;;  %v2349_v50 = vpop.f32.mrb[25].mxu1 }
 0x9fb   :  { %v983_v51 = vpop.f32.mrb[26].mxu1 }
 0x9fc   :  { %v2962_v52 = vadd.f32 %v2113_v48, %v987_v1  ;;  %v988_v53 = vadd.f32 %v983_v51, %v2894_v42  ;;  %v2350_v55 = vpop.f32.mrb[27].mxu1 }
 0x9fe   :  { %v2965_v56 = vadd.f32 %v2113_v48, %v988_v53  ;;  %v1037_v57 = vsel %vm73_vm0, %v2962_v52, 0.0 }
 0x9ff   :  { %1038 = vadd.xlane.f32.xlu0 %v1037_v57 }
 0xa00   :  { %v1040_v59 = vsel %vm73_vm0, %v2965_v56, 0.0 }
 0xa01   :  { %1041 = vadd.xlane.f32.xlu1 %v1040_v59 }
 0xa8c   :  { %v1039_v60 = vpop.xlane.xlu0 %1038 }
 0xa8d   :  { %v1043_v61 = vmul.f32 0.03125, %v1039_v60 }
 0xa8e   :  { %v1042_v38 = vpop.xlane.xlu1 %1041 }
 0xa8f   :  { %v1045_v62 = vsub.f32 %v2962_v52, %v1043_v61  ;;  %v1044_v63 = vmul.f32 0.03125, %v1042_v38 }
 0xa91   :  { %v1046_v2 = vsub.f32 %v2965_v56, %v1044_v63  ;;  %v1047_v42 = vmul.f32 %v1045_v62, %v1045_v62 }
 0xa93   :  { %v1049_v3 = vsel %vm73_vm0, %v1047_v42, 0.0  ;;  %v1048_v4 = vmul.f32 %v1046_v2, %v1046_v2 }
 0xa94   :  { %1050 = vadd.xlane.f32.xlu0 %v1049_v3 }
 0xa95   :  { %v1052_v5 = vsel %vm73_vm0, %v1048_v4, 0.0 }
 0xa96   :  { %1053 = vadd.xlane.f32.xlu1 %v1052_v5 }
 0xb21   :  { %v1051_v8 = vpop.xlane.xlu0 %1050 }
 0xb22   :  { %v1055_v9 = vmul.f32 0.03125, %v1051_v8 }
 0xb23   :  { %v1054_v10 = vpop.xlane.xlu1 %1053 }
 0xb24   :  { %v1057_v11 = vadd.f32 1e-05, %v1055_v9  ;;  %v1056_v12 = vmul.f32 0.03125, %v1054_v10 }
 0xb26   :  { %2573 = vrsqrt.f32 %v1057_v11  ;;  %v1058_v13 = vadd.f32 1e-05, %v1056_v12 }
 0xb28   :  { %2575 = vrsqrt.f32 %v1058_v13 }
 0xb30   :  { %v2574_v14 = vpop.eup %2573 }
 0xb31   :  { %v1061_v17 = vmul.f32 %v2574_v14, %v1045_v62 }
 0xb32   :  { %v2576_v18 = vpop.eup %2575 }
 0xb33   :  { %v1067_v19 = vmul.f32 %v2150_v16, %v1061_v17  ;;  %v1062_v20 = vmul.f32 %v2576_v18, %v1046_v2 }
 0xb35   :  { %v1068_v22 = vmul.f32 %v2150_v16, %v1062_v20  ;;  %v1073_v23 = vadd.f32 %v2151_v21, %v1067_v19 }
 0xb37   :  { %v1074_v24 = vadd.f32 %v2151_v21, %v1068_v22 }
 0xb39   :  { %v1075_v25 = vpack.c.bf16 %v1074_v24, %v1073_v23 }
 0xb3b   :  { %2356 = vmatmul.mubr.msk.bf16.vlgmr.msra.gmra.mrb[20].mxu0 %vm73_vm0, %v1075_v25 }
 0xb3c   :  { %2361 = vmatprep.mubr.msk.bf16.mxu0 %vm2646_vm1, %v2645_v15 }
 0xc0e   :  { %v1129_v27 = vpop.f32.mrb[20].mxu0 }
 0xc0f   :  { %v2357_v28 = vpop.f32.mrb[21].mxu0  ;;  %v1130_v30 = vadd.f32 %v2152_v26, %v1129_v27 }
 0xc10   :  { %v1132_v29 = vpop.f32.mrb[22].mxu0 }
 0xc11   :  { %v1133_v41 = vadd.f32 %v2152_v26, %v1132_v29  ;;  %v2358_v31 = vpop.f32.mrb[23].mxu0 }
 0xc13   :  { %v2995_v32 = vpack.c.bf16 %v1133_v41, %v1130_v30 }
 0xc15   :  { %1138 = vrot.lane.b32.xlu0 %v2995_v32, %s2648_s19 }
 0xc19   :  { %1265 = vrot.lane.b32.xlu0 %v2995_v32, %s2647_s18 }
 0xc1d   :  { %1263 = vrot.lane.b32.xlu0 %v2995_v32, %s2649_s20 }
 0xc21   :  { %1392 = vrot.lane.b32.xlu0 %v2995_v32, %s2651_s22 }
 0xc25   :  { %1519 = vrot.lane.b32.xlu0 %v2995_v32, %s2653_s24 }
 0xc87   :  { %v1139_v33 = vpop.permute.xlu0 %1138 }
 0xc88   :  { %v1144_v34 = vsel %vm178_vm2, %v1139_v33, 0 }
 0xc89   :  { %2360 = vmatpush3.bf16.xpose.msra.mxu0 %v1144_v34 }
 0xc8a   :  { %2365 = vmatprep.subr.bf16.mxu0 %v2645_v15 }
 0xc8b   :  { %v1266_v42 = vpop.permute.xlu0 %1265 }
 0xc8c   :  { %v1271_v8 = vsel %vm178_vm2, %v1266_v42, 0 }
 0xc8f   :  { %v1264_v7 = vpop.permute.xlu0 %1263 }
 0xc90   :  { %2362 = vmatmul.mubr.msk.bf16.vlgmr.msra.gmra.mrb[24].mxu0 %vm178_vm2, %v2995_v32 }
 0xc91   :  { %2367 = vmatprep.mubr.msk.bf16.mxu0 %vm2646_vm1, %v2645_v15 }
 0xc93   :  { %v1393_v9 = vpop.permute.xlu0 %1392 }
 0xc94   :  { %v1398_v10 = vsel %vm178_vm2, %v1393_v9, 0 }
 0xc97   :  { %v1520_v11 = vpop.permute.xlu0 %1519 }
 0xc98   :  { %v1525_v13 = vsel %vm178_vm2, %v1520_v11, 0 }
 0xd63   :  { %v1180_v35 = vpop.f32.mrb[24].mxu0 }
 0xd64   :  { %v1187_v36 = vmul.f32 0.35355338, %v1180_v35  ;;  %v2363_v37 = vpop.f32.mrb[25].mxu0 }
 0xd65   :  { %v1183_v39 = vpop.f32.mrb[26].mxu0 }
 0xd66   :  { %v1188_v40 = vmul.f32 0.35355338, %v1183_v39  ;;  %v2364_v43 = vpop.f32.mrb[27].mxu0  ;;  %v1189_v44 = vadd.f32 %v1187_v36, %v2792_v54 }
 0xd68   :  { %v1191_v45 = vsel %vm230_vm3, %v1189_v44, -inf  ;;  %v1190_v46 = vadd.f32 %v1188_v40, %v2797_v58 }
 0xd69   :  { %1192 = vmax.xlane.f32.xlu1 %v1191_v45 }
 0xd6a   :  { %v1194_v0 = vsel %vm230_vm3, %v1190_v46, -inf }
 0xd6d   :  { %1195 = vmax.xlane.f32.xlu1 %v1194_v0 }
 0xdf6   :  { %v1193_v47 = vpop.xlane.xlu1 %1192 }
 0xdf7   :  { %v1197_v48 = vsub.f32 %v1189_v44, %v1193_v47 }
 0xdf9   :  { %v1199_v49 = vmul.f32 1.442695, %v1197_v48 }
 0xdfa   :  { %v1196_v1 = vpop.xlane.xlu1 %1195 }
 0xdfb   :  { %2577 = vpow2.f32 %v1199_v49  ;;  %v1198_v50 = vsub.f32 %v1190_v46, %v1196_v1 }
 0xdfd   :  { %v1201_v51 = vmul.f32 1.442695, %v1198_v50 }
 0xdff   :  { %2579 = vpow2.f32 %v1201_v51 }
 0xe05   :  { %v2578_v53 = vpop.eup %2577 }
 0xe06   :  { %v1203_v55 = vsel %vm230_vm3, %v2578_v53, 0.0 }
 0xe07   :  { %1204 = vadd.xlane.f32.xlu1 %v1203_v55 }
 0xe09   :  { %v2580_v57 = vpop.eup %2579 }
 0xe0a   :  { %v1206_v59 = vsel %vm230_vm3, %v2580_v57, 0.0 }
 0xe0b   :  { %1207 = vadd.xlane.f32.xlu1 %v1206_v59 }
 0xe1c   :  { %1216 = vrot.lane.b32.xlu1 %v2995_v32, %s2654_s1 }
 0xe20   :  { %1390 = vrot.lane.b32.xlu1 %v2995_v32, %s2650_s21 }
 0xe24   :  { %1517 = vrot.lane.b32.xlu1 %v2995_v32, %s2652_s23 }
 0xe94   :  { %v1205_v60 = vpop.xlane.xlu1 %1204 }
 0xe95   :  { %v1209_v61 = vmax.f32 %v1205_v60, 1e-30 }
 0xe97   :  { %2581 = vrcp.f32 %v1209_v61 }
 0xe98   :  { %v1208_v38 = vpop.xlane.xlu1 %1207 }
 0xe99   :  { %v1210_v62 = vmax.f32 %v1208_v38, 1e-30 }
 0xe9b   :  { %2583 = vrcp.f32 %v1210_v62 }
 0xe9c   :  { %v1217_v63 = vpop.permute.xlu1 %1216 }
 0xe9d   :  { %2366 = vmatpush3.bf16.msra.mxu0 %v1217_v63 }
 0xe9e   :  { %2371 = vmatprep.subr.bf16.mxu0 %v2645_v15 }
 0xea0   :  { %v1391_v12 = vpop.permute.xlu1 %1390 }
 0xea1   :  { %v2582_v2 = vpop.eup %2581 }
 0xea2   :  { %v1213_v4 = vmul.f32 %v2582_v2, %v2578_v53 }
 0xea4   :  { %v1518_v14 = vpop.permute.xlu1 %1517 }
 0xea5   :  { %v2584_v3 = vpop.eup %2583 }
 0xea6   :  { %v1214_v5 = vmul.f32 %v2584_v3, %v2580_v57 }
 0xea8   :  { %v1215_v6 = vpack.c.bf16 %v1214_v5, %v1213_v4 }
 0xeaa   :  { %2368 = vmatmul.mubr.msk.bf16.vlgmr.msra.gmra.mrb[28].mxu0 %vm230_vm3, %v1215_v6 }
 0xeab   :  { %2372 = vmatpush3.bf16.xpose.msra.mxu0 %v1271_v8  ;;  %2373 = vmatprep.mubr.msk.bf16.mxu0 %vm2646_vm1, %v2645_v15 }
 0xeac   :  { %2383 = vmatprep.subr.bf16.mxu0 %v2645_v15 }
 0xeb2   :  { %2374 = vmatmul.mubr.msk.bf16.vlgmr.msra.gmra.mrb[32].mxu0 %vm178_vm2, %v1264_v7 }
 0xeb3   :  { %2384 = vmatpush3.bf16.xpose.msra.mxu0 %v1398_v10  ;;  %2385 = vmatprep.mubr.msk.bf16.mxu0 %vm2646_vm1, %v2645_v15 }
 0xeb4   :  { %2395 = vmatprep.subr.bf16.mxu0 %v2645_v15 }
 0xeba   :  { %2386 = vmatmul.mubr.msk.bf16.vlgmr.msra.gmra.mrb[36].mxu0 %vm178_vm2, %v1391_v12 }
 0xebb   :  { %2396 = vmatpush3.bf16.xpose.msra.mxu0 %v1525_v13  ;;  %2397 = vmatprep.mubr.msk.bf16.mxu0 %vm2646_vm1, %v2645_v15 }
 0xebc   :  { %2407 = vmatprep.subr.bf16.mxu0 %v2645_v15 }
 0xec2   :  { %2398 = vmatmul.mubr.msk.bf16.vlgmr.msra.gmra.mrb[40].mxu0 %vm178_vm2, %v1518_v14 }
 0xec3   :  { %2411 = vmatprep.mubr.msk.bf16.mxu0 %vm2646_vm1, %v2645_v15 }
 0xf7d   :  { %v3044_v16 = vpop.f32.mrb[28].mxu0 }
 0xf7e   :  { %v2369_v17 = vpop.f32.mrb[29].mxu0 }
 0xf7f   :  { %v3046_v18 = vpop.f32.mrb[30].mxu0 }
 0xf80   :  { %v2370_v19 = vpop.f32.mrb[31].mxu0 }
 0xf85   :  { %v1307_v20 = vpop.f32.mrb[32].mxu0 }
 0xf86   :  { %v1314_v21 = vmul.f32 0.35355338, %v1307_v20  ;;  %v2375_v22 = vpop.f32.mrb[33].mxu0 }
 0xf87   :  { %v1310_v23 = vpop.f32.mrb[34].mxu0 }
 0xf88   :  { %v1315_v24 = vmul.f32 0.35355338, %v1310_v23  ;;  %v2376_v25 = vpop.f32.mrb[35].mxu0  ;;  %v1316_v26 = vadd.f32 %v1314_v21, %v2792_v54 }
 0xf8a   :  { %v1318_v27 = vsel %vm230_vm3, %v1316_v26, -inf  ;;  %v1317_v28 = vadd.f32 %v1315_v24, %v2797_v58 }
 0xf8b   :  { %1319 = vmax.xlane.f32.xlu0 %v1318_v27 }
 0xf8c   :  { %v1321_v29 = vsel %vm230_vm3, %v1317_v28, -inf }
 0xf8d   :  { %1322 = vmax.xlane.f32.xlu1 %v1321_v29  ;;  %v1434_v30 = vpop.f32.mrb[36].mxu0 }
 0xf8e   :  { %v1441_v41 = vmul.f32 0.35355338, %v1434_v30  ;;  %v2387_v31 = vpop.f32.mrb[37].mxu0 }
 0xf8f   :  { %v1437_v33 = vpop.f32.mrb[38].mxu0 }
 0xf90   :  { %v1442_v34 = vmul.f32 0.35355338, %v1437_v33  ;;  %v2388_v35 = vpop.f32.mrb[39].mxu0  ;;  %v1443_v36 = vadd.f32 %v1441_v41, %v2792_v54 }
 0xf92   :  { %v1445_v37 = vsel %vm230_vm3, %v1443_v36, -inf  ;;  %v1444_v39 = vadd.f32 %v1442_v34, %v2797_v58 }
 0xf93   :  { %1446 = vmax.xlane.f32.xlu0 %v1445_v37 }
 0xf94   :  { %v1448_v45 = vsel %vm230_vm3, %v1444_v39, -inf }
 0xf95   :  { %v1561_v40 = vpop.f32.mrb[40].mxu0 }
 0xf96   :  { %v1568_v43 = vmul.f32 0.35355338, %v1561_v40  ;;  %v2399_v44 = vpop.f32.mrb[41].mxu0 }
 0xf97   :  { %1449 = vmax.xlane.f32.xlu0 %v1448_v45  ;;  %v1564_v46 = vpop.f32.mrb[42].mxu0 }
 0xf98   :  { %v1569_v0 = vmul.f32 0.35355338, %v1564_v46  ;;  %v2400_v47 = vpop.f32.mrb[43].mxu0  ;;  %v1570_v48 = vadd.f32 %v1568_v43, %v2792_v54 }
 0xf9a   :  { %v1572_v49 = vsel %vm230_vm3, %v1570_v48, -inf  ;;  %v1571_v1 = vadd.f32 %v1569_v0, %v2797_v58 }
 0xf9b   :  { %1573 = vmax.xlane.f32.xlu0 %v1572_v49 }
 0xf9c   :  { %v1575_v50 = vsel %vm230_vm3, %v1571_v1, -inf }
 0xf9d   :  { %1576 = vmax.xlane.f32.xlu1 %v1575_v50 }
0x1018   :  { %v1320_v51 = vpop.xlane.xlu0 %1319 }
0x1019   :  { %v1324_v53 = vsub.f32 %v1316_v26, %v1320_v51 }
0x101a   :  { %v1323_v55 = vpop.xlane.xlu1 %1322 }
0x101b   :  { %v1326_v57 = vmul.f32 1.442695, %v1324_v53  ;;  %v1325_v59 = vsub.f32 %v1317_v28, %v1323_v55 }
0x101d   :  { %2585 = vpow2.f32 %v1326_v57  ;;  %v1328_v60 = vmul.f32 1.442695, %v1325_v59  ;;  %v2515_v59 = vld [vmem:[%s3212_s2 + $0x50] sm:$0xff]  }
0x101e   :  { %2408 = vmatpush3.bf16.msra.mxu0 %v2515_v59 }
0x101f   :  { %2587 = vpow2.f32 %v1328_v60  ;;  %2409 = vmatprep.subr.bf16.mxu0 %v2645_v15 }
0x1020   :  { %v1447_v61 = vpop.xlane.xlu0 %1446 }
0x1021   :  { %v1451_v38 = vsub.f32 %v1443_v36, %v1447_v61 }
0x1023   :  { %v1453_v62 = vmul.f32 1.442695, %v1451_v38 }
0x1024   :  { %v1450_v54 = vpop.xlane.xlu0 %1449 }
0x1025   :  { %2589 = vpow2.f32 %v1453_v62  ;;  %v1452_v63 = vsub.f32 %v1444_v39, %v1450_v54 }
0x1027   :  { %v2586_v2 = vpop.eup %2585  ;;  %v1455_v58 = vmul.f32 1.442695, %v1452_v63 }
0x1028   :  { %v1574_v42 = vpop.xlane.xlu0 %1573  ;;  %v1330_v3 = vsel %vm230_vm3, %v2586_v2, 0.0 }
0x1029   :  { %v2588_v4 = vpop.eup %2587  ;;  %2591 = vpow2.f32 %v1455_v58  ;;  %v1578_v5 = vsub.f32 %v1570_v48, %v1574_v42  ;;  %1331 = vadd.xlane.f32.xlu0 %v1330_v3  ;;  %v2516_v58 = vld [vmem:[%s3212_s2 + $0x58] sm:$0xff]  }
0x102a   :  { %v1333_v6 = vsel %vm230_vm3, %v2588_v4, 0.0  ;;  %v1577_v14 = vpop.xlane.xlu1 %1576  ;;  %2410 = vmatpush3.bf16.msra.mxu0 %v2516_v58  ;;  %v2520_v58 = vld [vmem:[%s3213_s3 + $0x48] sm:$0xff]  }
0x102b   :  { %v1580_v7 = vmul.f32 1.442695, %v1578_v5  ;;  %1334 = vadd.xlane.f32.xlu1 %v1333_v6  ;;  %v1579_v17 = vsub.f32 %v1571_v1, %v1577_v14  ;;  %2423 = vmatprep.subr.bf16.mxu0 %v2645_v15 }
0x102d   :  { %2593 = vpow2.f32 %v1580_v7  ;;  %v1582_v19 = vmul.f32 1.442695, %v1579_v17 }
0x102f   :  { %v2590_v8 = vpop.eup %2589  ;;  %2595 = vpow2.f32 %v1582_v19 }
0x1030   :  { %v1457_v9 = vsel %vm230_vm3, %v2590_v8, 0.0 }
0x1031   :  { %1458 = vadd.xlane.f32.xlu0 %v1457_v9 }
0x1033   :  { %v2592_v10 = vpop.eup %2591 }
0x1034   :  { %v1460_v11 = vsel %vm230_vm3, %v2592_v10, 0.0 }
0x1035   :  { %1461 = vadd.xlane.f32.xlu1 %v1460_v11 }
0x1037   :  { %v2594_v12 = vpop.eup %2593 }
0x1038   :  { %v1584_v13 = vsel %vm230_vm3, %v2594_v12, 0.0 }
0x1039   :  { %1585 = vadd.xlane.f32.xlu0 %v1584_v13  ;;  %v2596_v20 = vpop.eup %2595 }
0x103a   :  { %v1587_v21 = vsel %vm230_vm3, %v2596_v20, 0.0 }
0x1046   :  { %1470 = vrot.lane.b32.xlu1 %v2995_v32, %s2655_s29 }
0x104f   :  { %1343 = vrot.lane.b32.xlu0 %v2995_v32, %s2657_s0 }
0x106a   :  { %1588 = vadd.xlane.f32.xlu1 %v1587_v21 }
0x107b   :  { %1597 = vrot.lane.b32.xlu1 %v2995_v32, %s2656_s30 }
0x10b6   :  { %v1332_v22 = vpop.xlane.xlu0 %1331 }
0x10b7   :  { %v1336_v24 = vmax.f32 %v1332_v22, 1e-30 }
0x10b8   :  { %v1335_v23 = vpop.xlane.xlu1 %1334 }
0x10b9   :  { %v1337_v25 = vmax.f32 %v1335_v23, 1e-30 }
0x10bb   :  { %2597 = vrcp.f32 %v1337_v25 }
0x10bc   :  { %2599 = vrcp.f32 %v1336_v24 }
0x10be   :  { %v1459_v26 = vpop.xlane.xlu0 %1458 }
0x10bf   :  { %v1463_v27 = vmax.f32 %v1459_v26, 1e-30 }
0x10c1   :  { %2601 = vrcp.f32 %v1463_v27 }
0x10c2   :  { %v1462_v28 = vpop.xlane.xlu1 %1461 }
0x10c3   :  { %v1464_v29 = vmax.f32 %v1462_v28, 1e-30 }
0x10c5   :  { %v2598_v30 = vpop.eup %2597  ;;  %2603 = vrcp.f32 %v1464_v29 }
0x10c6   :  { %v1586_v41 = vpop.xlane.xlu0 %1585  ;;  %v2600_v31 = vpop.eup %2599  ;;  %v1341_v33 = vmul.f32 %v2598_v30, %v2588_v4 }
0x10c7   :  { %v1340_v34 = vmul.f32 %v2600_v31, %v2586_v2  ;;  %v1471_v37 = vpop.permute.xlu1 %1470  ;;  %v1590_v45 = vmax.f32 %v1586_v41, 1e-30 }
0x10c9   :  { %v1342_v32 = vpack.c.bf16 %v1341_v33, %v1340_v34  ;;  %2605 = vrcp.f32 %v1590_v45  ;;  %v2517_v45 = vld [vmem:[%s3212_s2 + $0x40] sm:$0xff]  }
0x10ca   :  { %v1344_v35 = vpop.permute.xlu0 %1343 }
0x10cb   :  { %2378 = vmatpush3.bf16.msra.mxu1 %v1344_v35  ;;  %v2602_v36 = vpop.eup %2601 }
0x10cc   :  { %2389 = vmatprep.subr.bf16.mxu1 %v2645_v15  ;;  %v1467_v43 = vmul.f32 %v2602_v36, %v2590_v8 }
0x10ce   :  { %2380 = vmatmul.mubr.msk.bf16.vlgmr.msra.gmra.mrb[28].mxu1 %vm230_vm3, %v1342_v32 }
0x10cf   :  { %v2604_v39 = vpop.eup %2603  ;;  %2390 = vmatpush3.bf16.msra.mxu1 %v1471_v37  ;;  %2391 = vmatprep.mubr.msk.bf16.mxu1 %vm2646_vm1, %v2645_v15 }
0x10d0   :  { %v1468_v40 = vmul.f32 %v2604_v39, %v2592_v10  ;;  %2401 = vmatprep.subr.bf16.mxu1 %v2645_v15 }
0x10d2   :  { %v1469_v44 = vpack.c.bf16 %v1468_v40, %v1467_v43 }
0x10d3   :  { %v2606_v48 = vpop.eup %2605 }
0x10d4   :  { %v1594_v1 = vmul.f32 %v2606_v48, %v2594_v12 }
0x10d6   :  { %2392 = vmatmul.mubr.msk.bf16.vlgmr.msra.gmra.mrb[32].mxu1 %vm230_vm3, %v1469_v44 }
0x10d7   :  { %2403 = vmatprep.mubr.msk.bf16.mxu1 %vm2646_vm1, %v2645_v15 }
0x10f7   :  { %v1589_v46 = vpop.xlane.xlu1 %1588 }
0x10f8   :  { %v1591_v0 = vmax.f32 %v1589_v46, 1e-30  ;;  %v2518_v46 = vld [vmem:[%s3212_s2 + $0x48] sm:$0xff]  }
0x10fa   :  { %2607 = vrcp.f32 %v1591_v0 }
0x10fb   :  { %v1598_v47 = vpop.permute.xlu1 %1597 }
0x10fc   :  { %2402 = vmatpush3.bf16.msra.mxu1 %v1598_v47 }
0x10fd   :  { %2415 = vmatprep.subr.bf16.mxu1 %v2645_v15 }
0x1104   :  { %v2608_v49 = vpop.eup %2607 }
0x1105   :  { %v1595_v50 = vmul.f32 %v2608_v49, %v2596_v20 }
0x1107   :  { %v1596_v51 = vpack.c.bf16 %v1595_v50, %v1594_v1 }
0x1109   :  { %2404 = vmatmul.mubr.msk.bf16.vlgmr.msra.gmra.mrb[36].mxu1 %vm230_vm3, %v1596_v51 }
0x110a   :  { %2419 = vmatprep.mubr.msk.bf16.mxu1 %vm2646_vm1, %v2645_v15  ;;  %2416 = vmatpush3.bf16.msra.mxu1 %v2517_v45 }
0x110b   :  { %2417 = vmatprep.subr.bf16.mxu1 %v2645_v15 }
0x110e   :  { %2418 = vmatpush3.bf16.msra.mxu1 %v2518_v46 }
0x110f   :  { %2443 = vmatprep.subr.bf16.mxu1 %v2645_v15 }
0x11a1   :  { %v1383_v53 = vpop.f32.mrb[28].mxu1 }
0x11a2   :  { %v2381_v55 = vpop.f32.mrb[29].mxu1 }
0x11a3   :  { %v1386_v57 = vpop.f32.mrb[30].mxu1  ;;  %v2168_v55 = vld [vmem:[%s3215_s5 + $0x6] ss:$0 sm:$0xff] }
0x11a4   :  { %v2484_v60 = vpack.i.bf16 %v1386_v57, %v1383_v53  ;;  %v2382_v61 = vpop.f32.mrb[31].mxu1 }
0x11a5   :  { %v2169_v61 = vld [vmem:[%s3215_s5 + $0x7] ss:$0 sm:$0xff] }
0x11a6   :  { %2485 = vrot.lane.b32.xlu1 %v2484_v60, %s2658_s11 }
0x11a9   :  { %v1510_v38 = vpop.f32.mrb[32].mxu1 }
0x11aa   :  { %v2393_v62 = vpop.f32.mrb[33].mxu1 }
0x11ab   :  { %v1513_v54 = vpop.f32.mrb[34].mxu1 }
0x11ac   :  { %v2489_v63 = vpack.i.bf16 %v1513_v54, %v1510_v38  ;;  %v2394_v2 = vpop.f32.mrb[35].mxu1 }
0x11ad   :  { %v2519_v2 = vld [vmem:[%s3213_s3 + $0x40] sm:$0xff]  }
0x11ae   :  { %2490 = vrot.lane.b32.xlu0 %v2489_v63, %s2659_s14 }
0x11dc   :  { %v1637_v42 = vpop.f32.mrb[36].mxu1 }
0x11dd   :  { %v2405_v3 = vpop.f32.mrb[37].mxu1 }
0x11de   :  { %v1640_v4 = vpop.f32.mrb[38].mxu1  ;;  %v2522_v3 = vld [vmem:[%s3213_s3 + $0x58] sm:$0xff]  }
0x11df   :  { %v2494_v5 = vpack.i.bf16 %v1640_v4, %v1637_v42  ;;  %v2406_v6 = vpop.f32.mrb[39].mxu1  ;;  %v2521_v42 = vld [vmem:[%s3213_s3 + $0x50] sm:$0xff]   ;;  %v2523_v4 = vld [vmem:[%s3213_s3 + $0x60] sm:$0xff]  }
0x11e0   :  { %v2525_v6 = vld [vmem:[%s3213_s3 + $0x70] sm:$0xff]  }
0x11e1   :  { %2495 = vrot.lane.b32.xlu1 %v2494_v5, %s2660_s15  ;;  %v2524_v5 = vld [vmem:[%s3213_s3 + $0x68] sm:$0xff]  }
0x1218   :  { %v2486_v7 = vpop.permute.xlu1 %2485 }
0x1219   :  { %v2488_v9 = vunpack.i.h.bf16 %v2486_v7  ;;  %v2487_v10 = vunpack.i.l.bf16 %v2486_v7  ;;  %v2526_v7 = vld [vmem:[%s3213_s3 + $0x78] sm:$0xff]  }
0x121b   :  { %v1669_v14 = vsel %vm178_vm2, %v3046_v18, %v2488_v9  ;;  %v1668_v17 = vsel %vm178_vm2, %v3044_v16, %v2487_v10  ;;  %v2167_v16 = vld [vmem:[%s3216_s6 + $0x6] ss:$0 sm:$0xff] }
0x1220   :  { %v2491_v8 = vpop.permute.xlu0 %2490 }
0x1221   :  { %v2493_v11 = vunpack.i.h.bf16 %v2491_v8  ;;  %v2492_v12 = vunpack.i.l.bf16 %v2491_v8  ;;  %v2170_v8 = vld [vmem:[%s3216_s6 + $0x5] ss:$0 sm:$0xff] }
0x1223   :  { %v1671_v21 = vsel %vm230_vm3, %v1669_v14, %v2493_v11  ;;  %v1670_v22 = vsel %vm230_vm3, %v1668_v17, %v2492_v12 }
0x1253   :  { %v2496_v13 = vpop.permute.xlu1 %2495 }
0x1254   :  { %v2498_v19 = vunpack.i.h.bf16 %v2496_v13  ;;  %v2497_v20 = vunpack.i.l.bf16 %v2496_v13 }
0x1256   :  { %v1673_v23 = vsel %vm712_vm4, %v1671_v21, %v2498_v19  ;;  %v1672_v24 = vsel %vm712_vm4, %v1670_v22, %v2497_v20 }
0x1257   :  { %v1674_v25 = vpack.c.bf16 %v1673_v23, %v1672_v24 }
0x1259   :  { %2412 = vmatmul.mubr.msk.bf16.vlgmr.msra.gmra.mrb[44].mxu0 %vm73_vm0, %v1674_v25 }
0x125a   :  { %2439 = vmatprep.mubr.msk.bf16.mxu0 %vm2646_vm1, %v2645_v15  ;;  %2424 = vmatpush3.bf16.msra.mxu0 %v2519_v2 }
0x125b   :  { %2425 = vmatprep.subr.bf16.mxu0 %v2645_v15 }
0x125e   :  { %2426 = vmatpush3.bf16.msra.mxu0 %v2520_v58  ;;  %v2183_v58 = vld [vmem:[%s3217_s7] ss:$0 sm:$0xff] }
0x125f   :  { %2427 = vmatprep.subr.bf16.mxu0 %v2645_v15 }
0x1262   :  { %2428 = vmatpush3.bf16.msra.mxu0 %v2521_v42 }
0x1263   :  { %2429 = vmatprep.subr.bf16.mxu0 %v2645_v15 }
0x1266   :  { %2430 = vmatpush3.bf16.msra.mxu0 %v2522_v3 }
0x1267   :  { %2431 = vmatprep.subr.bf16.mxu0 %v2645_v15 }
0x126a   :  { %2432 = vmatpush3.bf16.msra.mxu0 %v2523_v4 }
0x126b   :  { %2433 = vmatprep.subr.bf16.mxu0 %v2645_v15 }
0x126e   :  { %2434 = vmatpush3.bf16.msra.mxu0 %v2524_v5 }
0x126f   :  { %2435 = vmatprep.subr.bf16.mxu0 %v2645_v15 }
0x1272   :  { %2436 = vmatpush3.bf16.msra.mxu0 %v2525_v6 }
0x1273   :  { %2437 = vmatprep.subr.bf16.mxu0 %v2645_v15 }
0x1276   :  { %2438 = vmatpush3.bf16.msra.mxu0 %v2526_v7 }
0x132c   :  { %v1724_v18 = vpop.f32.mrb[44].mxu0 }
0x132d   :  { %v1731_v26 = vadd.f32 %v1724_v18, %v2962_v52  ;;  %v2413_v27 = vpop.f32.mrb[45].mxu0 }
0x132e   :  { %v1727_v28 = vpop.f32.mrb[46].mxu0 }
0x132f   :  { %v3110_v29 = vadd.f32 %v2167_v16, %v1731_v26  ;;  %v1732_v30 = vadd.f32 %v1727_v28, %v2965_v56  ;;  %v2414_v41 = vpop.f32.mrb[47].mxu0 }
0x1331   :  { %v3113_v31 = vadd.f32 %v2167_v16, %v1732_v30  ;;  %v1739_v33 = vsel %vm73_vm0, %v3110_v29, 0.0 }
0x1332   :  { %1740 = vadd.xlane.f32.xlu0 %v1739_v33 }
0x1333   :  { %v1742_v34 = vsel %vm73_vm0, %v3113_v31, 0.0 }
0x1334   :  { %1743 = vadd.xlane.f32.xlu1 %v1742_v34 }
0x13bf   :  { %v1741_v35 = vpop.xlane.xlu0 %1740 }
0x13c0   :  { %v1745_v32 = vmul.f32 0.03125, %v1741_v35 }
0x13c1   :  { %v1744_v52 = vpop.xlane.xlu1 %1743 }
0x13c2   :  { %v1747_v36 = vsub.f32 %v3110_v29, %v1745_v32  ;;  %v1746_v37 = vmul.f32 0.03125, %v1744_v52 }
0x13c4   :  { %v1748_v39 = vsub.f32 %v3113_v31, %v1746_v37  ;;  %v1749_v56 = vmul.f32 %v1747_v36, %v1747_v36 }
0x13c6   :  { %v1751_v40 = vsel %vm73_vm0, %v1749_v56, 0.0  ;;  %v1750_v43 = vmul.f32 %v1748_v39, %v1748_v39 }
0x13c7   :  { %1752 = vadd.xlane.f32.xlu0 %v1751_v40 }
0x13c8   :  { %v1754_v44 = vsel %vm73_vm0, %v1750_v43, 0.0 }
0x13cb   :  { %1755 = vadd.xlane.f32.xlu0 %v1754_v44 }
0x1454   :  { %v1753_v0 = vpop.xlane.xlu0 %1752 }
0x1455   :  { %v1757_v47 = vmul.f32 0.03125, %v1753_v0 }
0x1457   :  { %v1759_v48 = vadd.f32 1e-05, %v1757_v47 }
0x1458   :  { %v1756_v49 = vpop.xlane.xlu0 %1755 }
0x1459   :  { %2609 = vrsqrt.f32 %v1759_v48  ;;  %v1758_v1 = vmul.f32 0.03125, %v1756_v49 }
0x145b   :  { %v1760_v50 = vadd.f32 1e-05, %v1758_v1 }
0x145d   :  { %2611 = vrsqrt.f32 %v1760_v50 }
0x1463   :  { %v2610_v51 = vpop.eup %2609 }
0x1464   :  { %v1763_v53 = vmul.f32 %v2610_v51, %v1747_v36  ;;  %v2182_v36 = vld [vmem:[%s3216_s6 + $0x7] ss:$0 sm:$0xff] }
0x1466   :  { %v1769_v59 = vmul.f32 %v2168_v55, %v1763_v53 }
0x1467   :  { %v2612_v57 = vpop.eup %2611 }
0x1468   :  { %v1764_v60 = vmul.f32 %v2612_v57, %v1748_v39  ;;  %v1775_v62 = vadd.f32 %v2169_v61, %v1769_v59  ;;  %v2527_v57 = vld [vmem:[%s3214_s4] sm:$0xff]   ;;  %v2528_v59 = vld [vmem:[%s3214_s4 + $0x8] sm:$0xff]  }
0x146a   :  { %v1770_v38 = vmul.f32 %v2168_v55, %v1764_v60 }
0x146c   :  { %v1776_v54 = vadd.f32 %v2169_v61, %v1770_v38 }
0x146e   :  { %v1777_v63 = vpack.c.bf16 %v1776_v54, %v1775_v62 }
0x1470   :  { %2420 = vmatmul.mubr.msk.bf16.vlgmr.msra.gmra.mrb[40].mxu1 %vm73_vm0, %v1777_v63 }
0x1471   :  { %2447 = vmatprep.mubr.msk.bf16.mxu1 %vm2646_vm1, %v2645_v15  ;;  %2444 = vmatpush3.bf16.msra.mxu1 %v2527_v57 }
0x1472   :  { %2445 = vmatprep.subr.bf16.mxu1 %v2645_v15  ;;  %v2184_v15 = vld [vmem:[%s3217_s7 + $0x1] ss:$0 sm:$0xff] }
0x1475   :  { %2446 = vmatpush3.bf16.msra.mxu1 %v2528_v59 }
0x1543   :  { %v1831_v9 = vpop.f32.mrb[40].mxu1 }
0x1544   :  { %v1832_v10 = vadd.f32 %v2170_v8, %v1831_v9  ;;  %v2421_v11 = vpop.f32.mrb[41].mxu1 }
0x1545   :  { %v1834_v12 = vpop.f32.mrb[42].mxu1 }
0x1546   :  { %v1840_v13 = vmul.f32 0.044715, %v1832_v10  ;;  %v1835_v14 = vadd.f32 %v2170_v8, %v1834_v12  ;;  %v2422_v17 = vpop.f32.mrb[43].mxu1  ;;  %v1838_v30 = vmul.f32 0.5, %v1832_v10 }
0x1548   :  { %v1842_v19 = vmul.f32 %v1840_v13, %v1832_v10  ;;  %v1841_v20 = vmul.f32 0.044715, %v1835_v14  ;;  %v1839_v41 = vmul.f32 0.5, %v1835_v14 }
0x154a   :  { %v1844_v21 = vmul.f32 %v1842_v19, %v1832_v10  ;;  %v1843_v22 = vmul.f32 %v1841_v20, %v1835_v14 }
0x154c   :  { %v1846_v23 = vadd.f32 %v1844_v21, %v1832_v10  ;;  %v1845_v24 = vmul.f32 %v1843_v22, %v1835_v14 }
0x154e   :  { %v1848_v25 = vmul.f32 0.7978846, %v1846_v23  ;;  %v1847_v16 = vadd.f32 %v1845_v24, %v1835_v14 }
0x1550   :  { %2613 = vtanh.f32 %v1848_v25  ;;  %v1849_v18 = vmul.f32 0.7978846, %v1847_v16 }
0x1552   :  { %2615 = vtanh.f32 %v1849_v18 }
0x155a   :  { %v2614_v26 = vpop.eup %2613 }
0x155b   :  { %v1852_v27 = vadd.f32 1.0, %v2614_v26 }
0x155c   :  { %v2616_v28 = vpop.eup %2615 }
0x155d   :  { %v1853_v33 = vadd.f32 1.0, %v2616_v28  ;;  %v1854_v34 = vmul.f32 %v1852_v27, %v1838_v30 }
0x155f   :  { %v1855_v35 = vmul.f32 %v1853_v33, %v1839_v41 }
0x1561   :  { %v1856_v32 = vpack.c.bf16 %v1855_v35, %v1854_v34 }
0x1563   :  { %2440 = vmatmul.mubr.bf16.vlgmr.msra.gmra.mrb[48].mxu0 %v1856_v32 }
0x1636   :  { %v1939_v52 = vpop.f32.mrb[48].mxu0 }
0x1637   :  { %v1946_v37 = vadd.f32 %v1939_v52, %v3110_v29  ;;  %v2441_v39 = vpop.f32.mrb[49].mxu0 }
0x1638   :  { %v1942_v56 = vpop.f32.mrb[50].mxu0 }
0x1639   :  { %v1947_v40 = vadd.f32 %v1942_v56, %v3113_v31  ;;  %v2442_v43 = vpop.f32.mrb[51].mxu0  ;;  %v1952_v44 = vadd.f32 %v2182_v36, %v1946_v37 }
0x163b   :  { %v1956_v45 = vsel %vm73_vm0, %v1952_v44, 0.0  ;;  %v1953_v46 = vadd.f32 %v2182_v36, %v1947_v40 }
0x163c   :  { %1957 = vadd.xlane.f32.xlu0 %v1956_v45 }
0x163d   :  { %v1959_v0 = vsel %vm73_vm0, %v1953_v46, 0.0 }
0x163e   :  { %1960 = vadd.xlane.f32.xlu1 %v1959_v0 }
0x16c9   :  { %v1958_v47 = vpop.xlane.xlu0 %1957 }
0x16ca   :  { %v1962_v48 = vmul.f32 0.03125, %v1958_v47 }
0x16cb   :  { %v1961_v49 = vpop.xlane.xlu1 %1960 }
0x16cc   :  { %v1964_v1 = vsub.f32 %v1952_v44, %v1962_v48  ;;  %v1963_v50 = vmul.f32 0.03125, %v1961_v49 }
0x16ce   :  { %v1965_v51 = vsub.f32 %v1953_v46, %v1963_v50  ;;  %v1966_v29 = vmul.f32 %v1964_v1, %v1964_v1 }
0x16d0   :  { %v1968_v53 = vsel %vm73_vm0, %v1966_v29, 0.0  ;;  %v1967_v55 = vmul.f32 %v1965_v51, %v1965_v51 }
0x16d1   :  { %1969 = vadd.xlane.f32.xlu0 %v1968_v53 }
0x16d2   :  { %v1971_v31 = vsel %vm73_vm0, %v1967_v55, 0.0 }
0x16d3   :  { %1972 = vadd.xlane.f32.xlu1 %v1971_v31 }
0x175e   :  { %v1970_v60 = vpop.xlane.xlu0 %1969 }
0x175f   :  { %v1974_v61 = vmul.f32 0.03125, %v1970_v60 }
0x1760   :  { %v1973_v38 = vpop.xlane.xlu1 %1972 }
0x1761   :  { %v1976_v62 = vadd.f32 1e-05, %v1974_v61  ;;  %v1975_v54 = vmul.f32 0.03125, %v1973_v38 }
0x1763   :  { %2617 = vrsqrt.f32 %v1976_v62  ;;  %v1977_v63 = vadd.f32 1e-05, %v1975_v54 }
0x1765   :  { %2619 = vrsqrt.f32 %v1977_v63 }
0x176d   :  { %v2618_v2 = vpop.eup %2617 }
0x176e   :  { %v1980_v42 = vmul.f32 %v2618_v2, %v1964_v1 }
0x176f   :  { %v2620_v3 = vpop.eup %2619 }
0x1770   :  { %v1986_v4 = vmul.f32 %v2183_v58, %v1980_v42  ;;  %v1981_v5 = vmul.f32 %v2620_v3, %v1965_v51 }
0x1772   :  { %v1987_v6 = vmul.f32 %v2183_v58, %v1981_v5  ;;  %v1992_v7 = vadd.f32 %v2184_v15, %v1986_v4 }
0x1774   :  { %v1993_v8 = vadd.f32 %v2184_v15, %v1987_v6 }
0x1776   :  { %v1994_v9 = vpack.c.bf16 %v1993_v8, %v1992_v7 }
0x1778   :  { %2448 = vmatmul.mubr.msk.bf16.vlgmr.msra.gmra.mrb[44].mxu1 %vm73_vm0, %v1994_v9 }
0x184b   :  { %v2048_v10 = vpop.f32.mrb[44].mxu1 }
0x184c   :  { %2055 = vst [vmem:[#allocation2] sm:$0xff] %v2048_v10  ;;  %v2449_v11 = vpop.f32.mrb[45].mxu1 }
0x184d   :  { %v2051_v12 = vpop.f32.mrb[46].mxu1 }
0x184e   :  { %2056 = vst [vmem:[#allocation2 + $0x8] sm:$0xff] %v2051_v12  ;;  %v2450_v13 = vpop.f32.mrb[47].mxu1 }
0x184f   :  { %2632 = shalt.err (!%p2629_p4)
}
0x1850   :  { %s2633_s5 = scalar_lea.hbm %s3218_s8, 256 }
0x1851   :  { %p2634_p5 = scmp.ne.s32.totalorder %s3218_s8, %s2633_s5  ;;  %p2637_p6 = scmp.lt.u32.totalorder %s2633_s5, %s3218_s8 }
0x1853   :  { %p2639_p7 = pnand %p2637_p6, %p2634_p5 }
0x1855   :  { %2642 = shalt.err (!%p2639_p7)
}
0x1856   :  { %s2662_s12 = smov 128  }
0x1857   :  { %2068 = dma.vmem_to_hbm [thread:$0]  %s2063_s17, 256, %s3218_s8, [#allocation3], %s2662_s12, %s2662_s12, %s2658_s11  }
0x1858   :  { %2643 = dma.done.wait [#allocation3], 256  }
0x1859   :  { %2644 = vsyncadd [#allocation3], 4294967040 }
0x185a   :  { %2072 = vsyncpa [#allocation3], 1 }

</bundles_post_ra>
